<compile_context>
chip_gen: v7x
topology: tpu7x:2x2x1
jax: 0.10.0
libtpu: 0.0.40
codegen_flags: <defaults>
</compile_context>

<pallas_src>
import functools
import math

import jax
import jax.numpy as jnp
from jax import lax
from jax.experimental import pallas as pl
from jax.experimental.pallas import tpu as pltpu

_GELU_K = math.sqrt(2.0 / math.pi)
_MASKED_BIAS = -10000.0          # Attention.masked_bias buffer


def _gelu_new(x):
    # GPT-2 "gelu_new" (tanh approximation), ACT2FN["gelu_new"].
    return 0.5 * x * (1.0 + jnp.tanh(_GELU_K * (x + 0.044715 * (x * x * x))))


def block_kernel(x_ref,
                 ln1_g_ref, ln1_b_ref,
                 w_attn_ref, b_attn_ref,
                 w_aproj_ref, b_aproj_ref,
                 ln2_g_ref, ln2_b_ref,
                 w_fc_ref, b_fc_ref,
                 w_mproj_ref, b_mproj_ref,
                 out_ref,
                 qkv_scr, attn_scr, acc_scr,
                 *, n_head, eps, q_tile, mlp_chunk):
    T, C = x_ref.shape                       # batch dim squeezed out by BlockSpec
    D = C // n_head
    n_qt = T // q_tile
    n_mc = (4 * C) // mlp_chunk

    def layernorm(v, g, b):
        mu = jnp.mean(v, axis=-1, keepdims=True)
        var = jnp.mean((v - mu) ** 2, axis=-1, keepdims=True)
        return (v - mu) * lax.rsqrt(var + eps) * g + b

    # ---- ln_1 + fused qkv projection -> bf16 scratch -------------------------
    # Three (T, C) column chunks keep the f32 transient at one chunk; the MXU
    # stays fully filled (K=C, N=C) and no per-head activation slices are made.
    h_bf = layernorm(x_ref[...].astype(jnp.float32),
                     ln1_g_ref[...], ln1_b_ref[...]).astype(jnp.bfloat16)
    for sec in range(3):                      # q / k / v sections of c_attn
        c0 = sec * C
        r = jnp.dot(h_bf, w_attn_ref[:, c0:c0 + C],
                    preferred_element_type=jnp.float32) + b_attn_ref[:, c0:c0 + C]
        qkv_scr[:, pl.ds(c0, C)] = r.astype(jnp.bfloat16)

    nt_dims = (((1,), (1,)), ((), ()))        # q @ k^T without transposing k

    # ---- attention + c_proj + residual + MLP, per query tile -----------------
    def tile_body(qi, carry):
        if isinstance(qi, int):
            q0 = qi * q_tile
        else:
            q0 = pl.multiple_of(qi * q_tile, q_tile)

        # causal additive bias, computed once per tile (shared by all heads)
        row = lax.broadcasted_iota(jnp.int32, (q_tile, T), 0) + q0
        col = lax.broadcasted_iota(jnp.int32, (q_tile, T), 1)
        mask_bias = jnp.where(row >= col,
                              jnp.float32(0.0), jnp.float32(_MASKED_BIAS))

        for hd in range(n_head):              # static; each head writes to scratch
            qh = qkv_scr[pl.ds(q0, q_tile), pl.ds(hd * D, D)]       # (q_tile, D) bf16
            kh = qkv_scr[:, pl.ds(C + hd * D, D)]                   # (T, D) bf16
            vh = qkv_scr[:, pl.ds(2 * C + hd * D, D)]               # (T, D) bf16
            s = lax.dot_general(qh, kh, nt_dims,
                                preferred_element_type=jnp.float32) + mask_bias
            # scale=False in the Block/Attention spec -> no 1/sqrt(D) scaling.
            s = s - jnp.max(s, axis=-1, keepdims=True)
            p = jnp.exp(s)
            p = p * pl.reciprocal(jnp.sum(p, axis=-1, keepdims=True), approx=True)
            o = jnp.dot(p.astype(jnp.bfloat16), vh,
                        preferred_element_type=jnp.float32)         # (q_tile, D)
            attn_scr[:, pl.ds(hd * D, D)] = o.astype(jnp.bfloat16)  # merge_heads

        # c_proj + residual for this tile (K=C -> full MXU fill)
        a = jnp.dot(attn_scr[...], w_aproj_ref[...],
                    preferred_element_type=jnp.float32) + b_aproj_ref[...]
        # TODO(synk): attn_dropout / resid_dropout are identity (inference semantics).
        x1 = x_ref[pl.ds(q0, q_tile), :].astype(jnp.float32) + a

        # ln_2 + MLP fused over the 4C hidden dim, accumulated in VMEM scratch.
        h2 = layernorm(x1, ln2_g_ref[...], ln2_b_ref[...]).astype(jnp.bfloat16)
        acc_scr[...] = x1 + b_mproj_ref[...]          # residual + c_proj bias
        for ci in range(n_mc):                        # static; no (T, 4C) tensor
            c0 = ci * mlp_chunk
            f = jnp.dot(h2, w_fc_ref[:, c0:c0 + mlp_chunk],
                        preferred_element_type=jnp.float32) + b_fc_ref[:, c0:c0 + mlp_chunk]
            f = _gelu_new(f)
            acc_scr[...] += jnp.dot(f.astype(jnp.bfloat16),
                                    w_mproj_ref[c0:c0 + mlp_chunk, :],
                                    preferred_element_type=jnp.float32)

        out_ref[pl.ds(q0, q_tile), :] = acc_scr[...].astype(out_ref.dtype)
        return carry

    if n_qt == 1:
        tile_body(0, 0)                       # static path (small T)
    else:
        lax.fori_loop(0, n_qt, tile_body, 0)


def _pick_chunk(total, target, step):
    """Largest divisor of `total` that is <= target and a multiple of `step`."""
    if total <= target:
        return total
    c = (target // step) * step
    while c >= step:
        if total % c == 0:
            return c
        c -= step
    # TODO(synk): pad T / hidden to a friendly multiple instead of falling back to full size.
    return total


def _vmem_limit_bytes():
    # ~48 MiB on v7x (64 MiB physical per TC), ~96 MiB on v5e/v6e (128 MiB physical).
    try:
        cap = pltpu.get_tpu_info().vmem_capacity_bytes
    except Exception:
        cap = 128 * 1024 * 1024
    return max(32 * 1024 * 1024, min(100 * 1024 * 1024, (cap * 3) // 4))


def gpt2_block(x, params, n_head, eps=1e-5):
    B, T, C = x.shape
    assert C % n_head == 0
    hidden = 4 * C

    vmem_limit = _vmem_limit_bytes()
    q_target = 256 if vmem_limit <= 48 * 1024 * 1024 else 512   # smaller tiles on v7x
    q_tile = _pick_chunk(T, q_target, 8)
    mlp_chunk = _pick_chunk(hidden, 512, 128)

    # Weight matrices feed the MXU in bf16 (f32 accumulation in-kernel);
    # biases and LayerNorm params stay f32.
    def prep(name):
        p = params[name]
        return p.astype(jnp.bfloat16) if name.startswith("w_") else p.astype(jnp.float32)

    order = ["ln1_g", "ln1_b", "w_attn", "b_attn", "w_aproj", "b_aproj",
             "ln2_g", "ln2_b", "w_fc", "b_fc", "w_mproj", "b_mproj"]
    plist = [prep(k) for k in order]

    # Grid-invariant params live whole in VMEM (single-buffered, no pipelining).
    # TODO(synk): for C >= 1024 on v7x, w_fc / w_mproj should move to pipelined
    # BlockSpecs blocked over the 4C hidden axis instead of whole-array residency.
    param_spec = pl.BlockSpec(memory_space=pltpu.MemorySpace.VMEM)

    flops = B * (24 * T * C * C + 4 * T * T * C)
    transcendentals = B * (n_head * T * T + T * hidden)          # softmax exp + gelu tanh
    bytes_accessed = (2 * B * T * C * 4                          # x in + out (f32)
                      + 2 * (3 * C * C + C * C + 2 * C * hidden)  # bf16 weights
                      + 4 * (3 * C + C + hidden + C + 4 * C))     # f32 biases / LN params

    kernel = functools.partial(block_kernel, n_head=n_head, eps=eps,
                               q_tile=q_tile, mlp_chunk=mlp_chunk)

    # TODO(synk): grid=(B,) only engages the second v7x TensorCore for B >= 2;
    # batch-1 inference would want a second parallel axis over query tiles.
    return pl.pallas_call(
        kernel,
        out_shape=jax.ShapeDtypeStruct((B, T, C), x.dtype),
        grid=(B,),
        in_specs=[pl.BlockSpec((None, T, C), lambda b: (b, 0, 0))] + [param_spec] * len(plist),
        out_specs=pl.BlockSpec((None, T, C), lambda b: (b, 0, 0)),
        scratch_shapes=[pltpu.VMEM((T, 3 * C), jnp.bfloat16),      # qkv (bf16, post-bias)
                        pltpu.VMEM((q_tile, C), jnp.bfloat16),     # merged head outputs
                        pltpu.VMEM((q_tile, C), jnp.float32)],     # MLP / output accumulator
        compiler_params=pltpu.CompilerParams(
            dimension_semantics=("parallel",),
            vmem_limit_bytes=vmem_limit),
        cost_estimate=pl.CostEstimate(flops=flops,
                                      transcendentals=transcendentals,
                                      bytes_accessed=bytes_accessed),
    )(x, *plist)


def ref_block(x, p, n_head, eps=1e-5):
    """Pure-JAX f32 reference, mirroring the PyTorch module semantics."""
    def ln(v, g, b):
        mu = v.mean(-1, keepdims=True)
        var = ((v - mu) ** 2).mean(-1, keepdims=True)
        return (v - mu) / jnp.sqrt(var + eps) * g + b

    B, T, C = x.shape
    D = C // n_head
    h = ln(x, p["ln1_g"], p["ln1_b"])
    qkv = h @ p["w_attn"] + p["b_attn"]
    q, k, v = jnp.split(qkv, 3, axis=-1)
    sh = lambda t: t.reshape(B, T, n_head, D).transpose(0, 2, 1, 3)
    qh, kh, vh = sh(q), sh(k), sh(v)
    w = qh @ kh.transpose(0, 1, 3, 2)                       # scale=False
    mask = jnp.tril(jnp.ones((T, T), dtype=bool))
    w = jnp.where(mask, w, jnp.float32(_MASKED_BIAS))
    w = jax.nn.softmax(w, axis=-1)
    a = (w @ vh).transpose(0, 2, 1, 3).reshape(B, T, C)
    a = a @ p["w_aproj"] + p["b_aproj"]
    x = x + a
    h2 = ln(x, p["ln2_g"], p["ln2_b"])
    f = _gelu_new(h2 @ p["w_fc"] + p["b_fc"])
    m = f @ p["w_mproj"] + p["b_mproj"]
    return x + m


def init_params(key, C):
    ks = jax.random.split(key, 8)
    std = 0.02
    return {
        "ln1_g": jnp.ones((1, C), jnp.float32),
        "ln1_b": jnp.zeros((1, C), jnp.float32),
        "w_attn": std * jax.random.normal(ks[0], (C, 3 * C), jnp.float32),
        "b_attn": std * jax.random.normal(ks[1], (1, 3 * C), jnp.float32),
        "w_aproj": std * jax.random.normal(ks[2], (C, C), jnp.float32),
        "b_aproj": std * jax.random.normal(ks[3], (1, C), jnp.float32),
        "ln2_g": jnp.ones((1, C), jnp.float32),
        "ln2_b": jnp.zeros((1, C), jnp.float32),
        "w_fc": std * jax.random.normal(ks[4], (C, 4 * C), jnp.float32),
        "b_fc": std * jax.random.normal(ks[5], (1, 4 * C), jnp.float32),
        "w_mproj": std * jax.random.normal(ks[6], (4 * C, C), jnp.float32),
        "b_mproj": std * jax.random.normal(ks[7], (1, C), jnp.float32),
    }


if __name__ == "__main__":
    B, T, C, n_head = 2, 8, 32, 4   # batch, n_ctx (=seq), n_embd, n_head
    key = jax.random.PRNGKey(0)
    kx, kp = jax.random.split(key)
    x = jax.random.normal(kx, (B, T, C), jnp.float32)
    params = init_params(kp, C)

    out = jax.block_until_ready(gpt2_block(x, params, n_head))
    ref = ref_block(x, params, n_head)
    assert out.shape == (B, T, C)
    # bf16 MXU operands vs. f32 reference -> relaxed tolerance.
    assert jnp.allclose(out, ref, atol=2e-2, rtol=2e-2), "mismatch vs reference"
    print("KERNEL_OK")
</pallas_src>

<mosaic_0001>
module attributes {stable_mosaic.version = 11 : i64} {
  func.func @block_kernel(%arg0: i32, %arg1: memref<1x8x32xf32, #tpu.memory_space<vmem>>, %arg2: memref<1x32xf32, #tpu.memory_space<vmem>>, %arg3: memref<1x32xf32, #tpu.memory_space<vmem>>, %arg4: memref<32x96xbf16, #tpu.memory_space<vmem>>, %arg5: memref<1x96xf32, #tpu.memory_space<vmem>>, %arg6: memref<32x32xbf16, #tpu.memory_space<vmem>>, %arg7: memref<1x32xf32, #tpu.memory_space<vmem>>, %arg8: memref<1x32xf32, #tpu.memory_space<vmem>>, %arg9: memref<1x32xf32, #tpu.memory_space<vmem>>, %arg10: memref<32x128xbf16, #tpu.memory_space<vmem>>, %arg11: memref<1x128xf32, #tpu.memory_space<vmem>>, %arg12: memref<128x32xbf16, #tpu.memory_space<vmem>>, %arg13: memref<1x32xf32, #tpu.memory_space<vmem>>, %arg14: memref<1x8x32xf32, #tpu.memory_space<vmem>>, %arg15: memref<8x96xbf16, #tpu.memory_space<vmem>>, %arg16: memref<8x32xbf16, #tpu.memory_space<vmem>>, %arg17: memref<8x32xf32, #tpu.memory_space<vmem>>) attributes {dimension_semantics = [#tpu.dimension_semantics<parallel>], iteration_bounds = array<i64: 2>, scalar_prefetch = 0 : i64, scratch_operands = 3 : i64, tpu.core_type = #tpu.core_type<tc>, window_params = [{transform_indices = @transform_0, window_bounds = array<i64: 1, 8, 32>}, {pipeline_mode = #tpu.pipeline_mode<synchronous>, transform_indices = @transform_1, window_bounds = array<i64: 1, 32>}, {pipeline_mode = #tpu.pipeline_mode<synchronous>, transform_indices = @transform_2, window_bounds = array<i64: 1, 32>}, {pipeline_mode = #tpu.pipeline_mode<synchronous>, transform_indices = @transform_3, window_bounds = array<i64: 32, 96>}, {pipeline_mode = #tpu.pipeline_mode<synchronous>, transform_indices = @transform_4, window_bounds = array<i64: 1, 96>}, {pipeline_mode = #tpu.pipeline_mode<synchronous>, transform_indices = @transform_5, window_bounds = array<i64: 32, 32>}, {pipeline_mode = #tpu.pipeline_mode<synchronous>, transform_indices = @transform_6, window_bounds = array<i64: 1, 32>}, {pipeline_mode = #tpu.pipeline_mode<synchronous>, transform_indices = @transform_7, window_bounds = array<i64: 1, 32>}, {pipeline_mode = #tpu.pipeline_mode<synchronous>, transform_indices = @transform_8, window_bounds = array<i64: 1, 32>}, {pipeline_mode = #tpu.pipeline_mode<synchronous>, transform_indices = @transform_9, window_bounds = array<i64: 32, 128>}, {pipeline_mode = #tpu.pipeline_mode<synchronous>, transform_indices = @transform_10, window_bounds = array<i64: 1, 128>}, {pipeline_mode = #tpu.pipeline_mode<synchronous>, transform_indices = @transform_11, window_bounds = array<i64: 128, 32>}, {pipeline_mode = #tpu.pipeline_mode<synchronous>, transform_indices = @transform_12, window_bounds = array<i64: 1, 32>}, {transform_indices = @transform_13, window_bounds = array<i64: 1, 8, 32>}]} {
    %c0 = arith.constant 0 : index
    %c0_0 = arith.constant 0 : index
    %c0_1 = arith.constant 0 : index
    %0 = vector.load %arg1[%c0, %c0_0, %c0_1] : memref<1x8x32xf32, #tpu.memory_space<vmem>>, vector<1x8x32xf32>
    %1 = vector.shape_cast %0 : vector<1x8x32xf32> to vector<8x32xf32>
    %c0_2 = arith.constant 0 : index
    %c0_3 = arith.constant 0 : index
    %2 = vector.load %arg2[%c0_2, %c0_3] : memref<1x32xf32, #tpu.memory_space<vmem>>, vector<1x32xf32>
    %c0_4 = arith.constant 0 : index
    %c0_5 = arith.constant 0 : index
    %3 = vector.load %arg3[%c0_4, %c0_5] : memref<1x32xf32, #tpu.memory_space<vmem>>, vector<1x32xf32>
    %cst = arith.constant dense<0.000000e+00> : vector<8xf32>
    %4 = vector.multi_reduction <add>, %1, %cst [1] : vector<8x32xf32> to vector<8xf32>
    %5 = vector.shape_cast %4 : vector<8xf32> to vector<8x1xf32>
    %cst_6 = arith.constant 3.200000e+01 : f32
    %6 = vector.broadcast %cst_6 : f32 to vector<8x1xf32>
    %7 = arith.divf %5, %6 : vector<8x1xf32>
    %8 = vector.broadcast %7 : vector<8x1xf32> to vector<8x32xf32>
    %9 = arith.subf %1, %8 : vector<8x32xf32>
    %10 = arith.mulf %9, %9 : vector<8x32xf32>
    %cst_7 = arith.constant dense<0.000000e+00> : vector<8xf32>
    %11 = vector.multi_reduction <add>, %10, %cst_7 [1] : vector<8x32xf32> to vector<8xf32>
    %12 = vector.shape_cast %11 : vector<8xf32> to vector<8x1xf32>
    %cst_8 = arith.constant 3.200000e+01 : f32
    %13 = vector.broadcast %cst_8 : f32 to vector<8x1xf32>
    %14 = arith.divf %12, %13 : vector<8x1xf32>
    %15 = vector.broadcast %7 : vector<8x1xf32> to vector<8x32xf32>
    %16 = arith.subf %1, %15 : vector<8x32xf32>
    %cst_9 = arith.constant 9.99999974E-6 : f32
    %17 = vector.broadcast %cst_9 : f32 to vector<8x1xf32>
    %18 = arith.addf %14, %17 : vector<8x1xf32>
    %19 = math.rsqrt %18 : vector<8x1xf32>
    %20 = vector.broadcast %19 : vector<8x1xf32> to vector<8x32xf32>
    %21 = arith.mulf %16, %20 : vector<8x32xf32>
    %22 = vector.broadcast %2 : vector<1x32xf32> to vector<8x32xf32>
    %23 = arith.mulf %21, %22 : vector<8x32xf32>
    %24 = vector.broadcast %3 : vector<1x32xf32> to vector<8x32xf32>
    %25 = arith.addf %23, %24 : vector<8x32xf32>
    %26 = arith.truncf %25 : vector<8x32xf32> to vector<8x32xbf16>
    %c0_10 = arith.constant 0 : index
    %c0_11 = arith.constant 0 : index
    %27 = vector.load %arg4[%c0_10, %c0_11] : memref<32x96xbf16, #tpu.memory_space<vmem>>, vector<32x32xbf16>
    %cst_12 = arith.constant dense<0.000000e+00> : vector<8x32xf32>
    %28 = tpu.matmul %26, %27, %cst_12 {dimension_numbers = #tpu.dot_dimension_numbers<[1], [0], [0], [1], [0, 0, 1, 1], [], []>} : vector<8x32xbf16>, vector<32x32xbf16>, vector<8x32xf32> -> vector<8x32xf32>
    %c0_13 = arith.constant 0 : index
    %c0_14 = arith.constant 0 : index
    %29 = vector.load %arg5[%c0_13, %c0_14] : memref<1x96xf32, #tpu.memory_space<vmem>>, vector<1x32xf32>
    %30 = vector.broadcast %29 : vector<1x32xf32> to vector<8x32xf32>
    %31 = arith.addf %28, %30 : vector<8x32xf32>
    %32 = arith.truncf %31 : vector<8x32xf32> to vector<8x32xbf16>
    %c0_15 = arith.constant 0 : index
    %c0_16 = arith.constant 0 : index
    %33 = vector.load %arg15[%c0_15, %c0_16] : memref<8x96xbf16, #tpu.memory_space<vmem>>, vector<8x32xbf16>
    tpu.vector_store %arg15[%c0_15, %c0_16], %32 {strides = array<i32>} : memref<8x96xbf16, #tpu.memory_space<vmem>>, vector<8x32xbf16>,
    %c0_17 = arith.constant 0 : index
    %c32 = arith.constant 32 : index
    %34 = vector.load %arg4[%c0_17, %c32] : memref<32x96xbf16, #tpu.memory_space<vmem>>, vector<32x32xbf16>
    %cst_18 = arith.constant dense<0.000000e+00> : vector<8x32xf32>
    %35 = tpu.matmul %26, %34, %cst_18 {dimension_numbers = #tpu.dot_dimension_numbers<[1], [0], [0], [1], [0, 0, 1, 1], [], []>} : vector<8x32xbf16>, vector<32x32xbf16>, vector<8x32xf32> -> vector<8x32xf32>
    %c0_19 = arith.constant 0 : index
    %c32_20 = arith.constant 32 : index
    %36 = vector.load %arg5[%c0_19, %c32_20] : memref<1x96xf32, #tpu.memory_space<vmem>>, vector<1x32xf32>
    %37 = vector.broadcast %36 : vector<1x32xf32> to vector<8x32xf32>
    %38 = arith.addf %35, %37 : vector<8x32xf32>
    %39 = arith.truncf %38 : vector<8x32xf32> to vector<8x32xbf16>
    %c0_21 = arith.constant 0 : index
    %c32_22 = arith.constant 32 : index
    %40 = vector.load %arg15[%c0_21, %c32_22] : memref<8x96xbf16, #tpu.memory_space<vmem>>, vector<8x32xbf16>
    tpu.vector_store %arg15[%c0_21, %c32_22], %39 {strides = array<i32>} : memref<8x96xbf16, #tpu.memory_space<vmem>>, vector<8x32xbf16>,
    %c0_23 = arith.constant 0 : index
    %c64 = arith.constant 64 : index
    %41 = vector.load %arg4[%c0_23, %c64] : memref<32x96xbf16, #tpu.memory_space<vmem>>, vector<32x32xbf16>
    %cst_24 = arith.constant dense<0.000000e+00> : vector<8x32xf32>
    %42 = tpu.matmul %26, %41, %cst_24 {dimension_numbers = #tpu.dot_dimension_numbers<[1], [0], [0], [1], [0, 0, 1, 1], [], []>} : vector<8x32xbf16>, vector<32x32xbf16>, vector<8x32xf32> -> vector<8x32xf32>
    %c0_25 = arith.constant 0 : index
    %c64_26 = arith.constant 64 : index
    %43 = vector.load %arg5[%c0_25, %c64_26] : memref<1x96xf32, #tpu.memory_space<vmem>>, vector<1x32xf32>
    %44 = vector.broadcast %43 : vector<1x32xf32> to vector<8x32xf32>
    %45 = arith.addf %42, %44 : vector<8x32xf32>
    %46 = arith.truncf %45 : vector<8x32xf32> to vector<8x32xbf16>
    %c0_27 = arith.constant 0 : index
    %c64_28 = arith.constant 64 : index
    %47 = vector.load %arg15[%c0_27, %c64_28] : memref<8x96xbf16, #tpu.memory_space<vmem>>, vector<8x32xbf16>
    tpu.vector_store %arg15[%c0_27, %c64_28], %46 {strides = array<i32>} : memref<8x96xbf16, #tpu.memory_space<vmem>>, vector<8x32xbf16>,
    %48 = tpu.iota {dimensions = array<i32: 0>} : vector<8x8xi32>
    %c0_i32 = arith.constant 0 : i32
    %49 = vector.broadcast %c0_i32 : i32 to vector<8x8xi32>
    %50 = arith.addi %48, %49 : vector<8x8xi32>
    %51 = tpu.iota {dimensions = array<i32: 1>} : vector<8x8xi32>
    %52 = arith.cmpi sge, %50, %51 : vector<8x8xi32>
    %cst_29 = arith.constant 0.000000e+00 : f32
    %cst_30 = arith.constant -1.000000e+04 : f32
    %53 = vector.broadcast %cst_29 : f32 to vector<8x8xf32>
    %54 = vector.broadcast %cst_30 : f32 to vector<8x8xf32>
    %55 = arith.select %52, %53, %54 : vector<8x8xi1>, vector<8x8xf32>
    %c0_31 = arith.constant 0 : index
    %c0_32 = arith.constant 0 : index
    %56 = vector.load %arg15[%c0_31, %c0_32] : memref<8x96xbf16, #tpu.memory_space<vmem>>, vector<8x8xbf16>
    %c0_33 = arith.constant 0 : index
    %c32_34 = arith.constant 32 : index
    %57 = vector.load %arg15[%c0_33, %c32_34] : memref<8x96xbf16, #tpu.memory_space<vmem>>, vector<8x8xbf16>
    %c0_35 = arith.constant 0 : index
    %c64_36 = arith.constant 64 : index
    %58 = vector.load %arg15[%c0_35, %c64_36] : memref<8x96xbf16, #tpu.memory_space<vmem>>, vector<8x8xbf16>
    %cst_37 = arith.constant dense<0.000000e+00> : vector<8x8xf32>
    %59 = tpu.matmul %56, %57, %cst_37 {dimension_numbers = #tpu.dot_dimension_numbers<[1], [1], [0], [0], [0, 0, 1, 0], [], []>} : vector<8x8xbf16>, vector<8x8xbf16>, vector<8x8xf32> -> vector<8x8xf32>
    %60 = arith.addf %59, %55 : vector<8x8xf32>
    %cst_38 = arith.constant dense<0xFF800000> : vector<8xf32>
    %61 = vector.multi_reduction <maximumf>, %60, %cst_38 [1] : vector<8x8xf32> to vector<8xf32>
    %62 = vector.shape_cast %61 : vector<8xf32> to vector<8x1xf32>
    %63 = vector.broadcast %62 : vector<8x1xf32> to vector<8x8xf32>
    %64 = arith.subf %60, %63 : vector<8x8xf32>
    %65 = math.exp %64 : vector<8x8xf32>
    %cst_39 = arith.constant dense<0.000000e+00> : vector<8xf32>
    %66 = vector.multi_reduction <add>, %65, %cst_39 [1] : vector<8x8xf32> to vector<8xf32>
    %67 = vector.shape_cast %66 : vector<8xf32> to vector<8x1xf32>
    %68 = tpu.reciprocal %67 {approx = true} : vector<8x1xf32> -> vector<8x1xf32>
    %69 = vector.broadcast %68 : vector<8x1xf32> to vector<8x8xf32>
    %70 = arith.mulf %65, %69 : vector<8x8xf32>
    %71 = arith.truncf %70 : vector<8x8xf32> to vector<8x8xbf16>
    %cst_40 = arith.constant dense<0.000000e+00> : vector<8x8xf32>
    %72 = tpu.matmul %71, %58, %cst_40 {dimension_numbers = #tpu.dot_dimension_numbers<[1], [0], [0], [1], [0, 0, 1, 1], [], []>} : vector<8x8xbf16>, vector<8x8xbf16>, vector<8x8xf32> -> vector<8x8xf32>
    %73 = arith.truncf %72 : vector<8x8xf32> to vector<8x8xbf16>
    %c0_41 = arith.constant 0 : index
    %c0_42 = arith.constant 0 : index
    %74 = vector.load %arg16[%c0_41, %c0_42] : memref<8x32xbf16, #tpu.memory_space<vmem>>, vector<8x8xbf16>
    tpu.vector_store %arg16[%c0_41, %c0_42], %73 {strides = array<i32>} : memref<8x32xbf16, #tpu.memory_space<vmem>>, vector<8x8xbf16>,
    %c0_43 = arith.constant 0 : index
    %c8 = arith.constant 8 : index
    %75 = vector.load %arg15[%c0_43, %c8] : memref<8x96xbf16, #tpu.memory_space<vmem>>, vector<8x8xbf16>
    %c0_44 = arith.constant 0 : index
    %c40 = arith.constant 40 : index
    %76 = vector.load %arg15[%c0_44, %c40] : memref<8x96xbf16, #tpu.memory_space<vmem>>, vector<8x8xbf16>
    %c0_45 = arith.constant 0 : index
    %c72 = arith.constant 72 : index
    %77 = vector.load %arg15[%c0_45, %c72] : memref<8x96xbf16, #tpu.memory_space<vmem>>, vector<8x8xbf16>
    %cst_46 = arith.constant dense<0.000000e+00> : vector<8x8xf32>
    %78 = tpu.matmul %75, %76, %cst_46 {dimension_numbers = #tpu.dot_dimension_numbers<[1], [1], [0], [0], [0, 0, 1, 0], [], []>} : vector<8x8xbf16>, vector<8x8xbf16>, vector<8x8xf32> -> vector<8x8xf32>
    %79 = arith.addf %78, %55 : vector<8x8xf32>
    %cst_47 = arith.constant dense<0xFF800000> : vector<8xf32>
    %80 = vector.multi_reduction <maximumf>, %79, %cst_47 [1] : vector<8x8xf32> to vector<8xf32>
    %81 = vector.shape_cast %80 : vector<8xf32> to vector<8x1xf32>
    %82 = vector.broadcast %81 : vector<8x1xf32> to vector<8x8xf32>
    %83 = arith.subf %79, %82 : vector<8x8xf32>
    %84 = math.exp %83 : vector<8x8xf32>
    %cst_48 = arith.constant dense<0.000000e+00> : vector<8xf32>
    %85 = vector.multi_reduction <add>, %84, %cst_48 [1] : vector<8x8xf32> to vector<8xf32>
    %86 = vector.shape_cast %85 : vector<8xf32> to vector<8x1xf32>
    %87 = tpu.reciprocal %86 {approx = true} : vector<8x1xf32> -> vector<8x1xf32>
    %88 = vector.broadcast %87 : vector<8x1xf32> to vector<8x8xf32>
    %89 = arith.mulf %84, %88 : vector<8x8xf32>
    %90 = arith.truncf %89 : vector<8x8xf32> to vector<8x8xbf16>
    %cst_49 = arith.constant dense<0.000000e+00> : vector<8x8xf32>
    %91 = tpu.matmul %90, %77, %cst_49 {dimension_numbers = #tpu.dot_dimension_numbers<[1], [0], [0], [1], [0, 0, 1, 1], [], []>} : vector<8x8xbf16>, vector<8x8xbf16>, vector<8x8xf32> -> vector<8x8xf32>
    %92 = arith.truncf %91 : vector<8x8xf32> to vector<8x8xbf16>
    %c0_50 = arith.constant 0 : index
    %c8_51 = arith.constant 8 : index
    %93 = vector.load %arg16[%c0_50, %c8_51] : memref<8x32xbf16, #tpu.memory_space<vmem>>, vector<8x8xbf16>
    tpu.vector_store %arg16[%c0_50, %c8_51], %92 {strides = array<i32>} : memref<8x32xbf16, #tpu.memory_space<vmem>>, vector<8x8xbf16>,
    %c0_52 = arith.constant 0 : index
    %c16 = arith.constant 16 : index
    %94 = vector.load %arg15[%c0_52, %c16] : memref<8x96xbf16, #tpu.memory_space<vmem>>, vector<8x8xbf16>
    %c0_53 = arith.constant 0 : index
    %c48 = arith.constant 48 : index
    %95 = vector.load %arg15[%c0_53, %c48] : memref<8x96xbf16, #tpu.memory_space<vmem>>, vector<8x8xbf16>
    %c0_54 = arith.constant 0 : index
    %c80 = arith.constant 80 : index
    %96 = vector.load %arg15[%c0_54, %c80] : memref<8x96xbf16, #tpu.memory_space<vmem>>, vector<8x8xbf16>
    %cst_55 = arith.constant dense<0.000000e+00> : vector<8x8xf32>
    %97 = tpu.matmul %94, %95, %cst_55 {dimension_numbers = #tpu.dot_dimension_numbers<[1], [1], [0], [0], [0, 0, 1, 0], [], []>} : vector<8x8xbf16>, vector<8x8xbf16>, vector<8x8xf32> -> vector<8x8xf32>
    %98 = arith.addf %97, %55 : vector<8x8xf32>
    %cst_56 = arith.constant dense<0xFF800000> : vector<8xf32>
    %99 = vector.multi_reduction <maximumf>, %98, %cst_56 [1] : vector<8x8xf32> to vector<8xf32>
    %100 = vector.shape_cast %99 : vector<8xf32> to vector<8x1xf32>
    %101 = vector.broadcast %100 : vector<8x1xf32> to vector<8x8xf32>
    %102 = arith.subf %98, %101 : vector<8x8xf32>
    %103 = math.exp %102 : vector<8x8xf32>
    %cst_57 = arith.constant dense<0.000000e+00> : vector<8xf32>
    %104 = vector.multi_reduction <add>, %103, %cst_57 [1] : vector<8x8xf32> to vector<8xf32>
    %105 = vector.shape_cast %104 : vector<8xf32> to vector<8x1xf32>
    %106 = tpu.reciprocal %105 {approx = true} : vector<8x1xf32> -> vector<8x1xf32>
    %107 = vector.broadcast %106 : vector<8x1xf32> to vector<8x8xf32>
    %108 = arith.mulf %103, %107 : vector<8x8xf32>
    %109 = arith.truncf %108 : vector<8x8xf32> to vector<8x8xbf16>
    %cst_58 = arith.constant dense<0.000000e+00> : vector<8x8xf32>
    %110 = tpu.matmul %109, %96, %cst_58 {dimension_numbers = #tpu.dot_dimension_numbers<[1], [0], [0], [1], [0, 0, 1, 1], [], []>} : vector<8x8xbf16>, vector<8x8xbf16>, vector<8x8xf32> -> vector<8x8xf32>
    %111 = arith.truncf %110 : vector<8x8xf32> to vector<8x8xbf16>
    %c0_59 = arith.constant 0 : index
    %c16_60 = arith.constant 16 : index
    %112 = vector.load %arg16[%c0_59, %c16_60] : memref<8x32xbf16, #tpu.memory_space<vmem>>, vector<8x8xbf16>
    tpu.vector_store %arg16[%c0_59, %c16_60], %111 {strides = array<i32>} : memref<8x32xbf16, #tpu.memory_space<vmem>>, vector<8x8xbf16>,
    %c0_61 = arith.constant 0 : index
    %c24 = arith.constant 24 : index
    %113 = vector.load %arg15[%c0_61, %c24] : memref<8x96xbf16, #tpu.memory_space<vmem>>, vector<8x8xbf16>
    %c0_62 = arith.constant 0 : index
    %c56 = arith.constant 56 : index
    %114 = vector.load %arg15[%c0_62, %c56] : memref<8x96xbf16, #tpu.memory_space<vmem>>, vector<8x8xbf16>
    %c0_63 = arith.constant 0 : index
    %c88 = arith.constant 88 : index
    %115 = vector.load %arg15[%c0_63, %c88] : memref<8x96xbf16, #tpu.memory_space<vmem>>, vector<8x8xbf16>
    %cst_64 = arith.constant dense<0.000000e+00> : vector<8x8xf32>
    %116 = tpu.matmul %113, %114, %cst_64 {dimension_numbers = #tpu.dot_dimension_numbers<[1], [1], [0], [0], [0, 0, 1, 0], [], []>} : vector<8x8xbf16>, vector<8x8xbf16>, vector<8x8xf32> -> vector<8x8xf32>
    %117 = arith.addf %116, %55 : vector<8x8xf32>
    %cst_65 = arith.constant dense<0xFF800000> : vector<8xf32>
    %118 = vector.multi_reduction <maximumf>, %117, %cst_65 [1] : vector<8x8xf32> to vector<8xf32>
    %119 = vector.shape_cast %118 : vector<8xf32> to vector<8x1xf32>
    %120 = vector.broadcast %119 : vector<8x1xf32> to vector<8x8xf32>
    %121 = arith.subf %117, %120 : vector<8x8xf32>
    %122 = math.exp %121 : vector<8x8xf32>
    %cst_66 = arith.constant dense<0.000000e+00> : vector<8xf32>
    %123 = vector.multi_reduction <add>, %122, %cst_66 [1] : vector<8x8xf32> to vector<8xf32>
    %124 = vector.shape_cast %123 : vector<8xf32> to vector<8x1xf32>
    %125 = tpu.reciprocal %124 {approx = true} : vector<8x1xf32> -> vector<8x1xf32>
    %126 = vector.broadcast %125 : vector<8x1xf32> to vector<8x8xf32>
    %127 = arith.mulf %122, %126 : vector<8x8xf32>
    %128 = arith.truncf %127 : vector<8x8xf32> to vector<8x8xbf16>
    %cst_67 = arith.constant dense<0.000000e+00> : vector<8x8xf32>
    %129 = tpu.matmul %128, %115, %cst_67 {dimension_numbers = #tpu.dot_dimension_numbers<[1], [0], [0], [1], [0, 0, 1, 1], [], []>} : vector<8x8xbf16>, vector<8x8xbf16>, vector<8x8xf32> -> vector<8x8xf32>
    %130 = arith.truncf %129 : vector<8x8xf32> to vector<8x8xbf16>
    %c0_68 = arith.constant 0 : index
    %c24_69 = arith.constant 24 : index
    %131 = vector.load %arg16[%c0_68, %c24_69] : memref<8x32xbf16, #tpu.memory_space<vmem>>, vector<8x8xbf16>
    tpu.vector_store %arg16[%c0_68, %c24_69], %130 {strides = array<i32>} : memref<8x32xbf16, #tpu.memory_space<vmem>>, vector<8x8xbf16>,
    %c0_70 = arith.constant 0 : index
    %c0_71 = arith.constant 0 : index
    %132 = vector.load %arg16[%c0_70, %c0_71] : memref<8x32xbf16, #tpu.memory_space<vmem>>, vector<8x32xbf16>
    %c0_72 = arith.constant 0 : index
    %c0_73 = arith.constant 0 : index
    %133 = vector.load %arg6[%c0_72, %c0_73] : memref<32x32xbf16, #tpu.memory_space<vmem>>, vector<32x32xbf16>
    %cst_74 = arith.constant dense<0.000000e+00> : vector<8x32xf32>
    %134 = tpu.matmul %132, %133, %cst_74 {dimension_numbers = #tpu.dot_dimension_numbers<[1], [0], [0], [1], [0, 0, 1, 1], [], []>} : vector<8x32xbf16>, vector<32x32xbf16>, vector<8x32xf32> -> vector<8x32xf32>
    %c0_75 = arith.constant 0 : index
    %c0_76 = arith.constant 0 : index
    %135 = vector.load %arg7[%c0_75, %c0_76] : memref<1x32xf32, #tpu.memory_space<vmem>>, vector<1x32xf32>
    %136 = vector.broadcast %135 : vector<1x32xf32> to vector<8x32xf32>
    %137 = arith.addf %134, %136 : vector<8x32xf32>
    %c0_77 = arith.constant 0 : index
    %c0_78 = arith.constant 0 : index
    %c0_79 = arith.constant 0 : index
    %138 = vector.load %arg1[%c0_77, %c0_78, %c0_79] : memref<1x8x32xf32, #tpu.memory_space<vmem>>, vector<1x8x32xf32>
    %139 = vector.shape_cast %138 : vector<1x8x32xf32> to vector<8x32xf32>
    %140 = arith.addf %139, %137 : vector<8x32xf32>
    %c0_80 = arith.constant 0 : index
    %c0_81 = arith.constant 0 : index
    %141 = vector.load %arg8[%c0_80, %c0_81] : memref<1x32xf32, #tpu.memory_space<vmem>>, vector<1x32xf32>
    %c0_82 = arith.constant 0 : index
    %c0_83 = arith.constant 0 : index
    %142 = vector.load %arg9[%c0_82, %c0_83] : memref<1x32xf32, #tpu.memory_space<vmem>>, vector<1x32xf32>
    %cst_84 = arith.constant dense<0.000000e+00> : vector<8xf32>
    %143 = vector.multi_reduction <add>, %140, %cst_84 [1] : vector<8x32xf32> to vector<8xf32>
    %144 = vector.shape_cast %143 : vector<8xf32> to vector<8x1xf32>
    %cst_85 = arith.constant 3.200000e+01 : f32
    %145 = vector.broadcast %cst_85 : f32 to vector<8x1xf32>
    %146 = arith.divf %144, %145 : vector<8x1xf32>
    %147 = vector.broadcast %146 : vector<8x1xf32> to vector<8x32xf32>
    %148 = arith.subf %140, %147 : vector<8x32xf32>
    %149 = arith.mulf %148, %148 : vector<8x32xf32>
    %cst_86 = arith.constant dense<0.000000e+00> : vector<8xf32>
    %150 = vector.multi_reduction <add>, %149, %cst_86 [1] : vector<8x32xf32> to vector<8xf32>
    %151 = vector.shape_cast %150 : vector<8xf32> to vector<8x1xf32>
    %cst_87 = arith.constant 3.200000e+01 : f32
    %152 = vector.broadcast %cst_87 : f32 to vector<8x1xf32>
    %153 = arith.divf %151, %152 : vector<8x1xf32>
    %154 = vector.broadcast %146 : vector<8x1xf32> to vector<8x32xf32>
    %155 = arith.subf %140, %154 : vector<8x32xf32>
    %cst_88 = arith.constant 9.99999974E-6 : f32
    %156 = vector.broadcast %cst_88 : f32 to vector<8x1xf32>
    %157 = arith.addf %153, %156 : vector<8x1xf32>
    %158 = math.rsqrt %157 : vector<8x1xf32>
    %159 = vector.broadcast %158 : vector<8x1xf32> to vector<8x32xf32>
    %160 = arith.mulf %155, %159 : vector<8x32xf32>
    %161 = vector.broadcast %141 : vector<1x32xf32> to vector<8x32xf32>
    %162 = arith.mulf %160, %161 : vector<8x32xf32>
    %163 = vector.broadcast %142 : vector<1x32xf32> to vector<8x32xf32>
    %164 = arith.addf %162, %163 : vector<8x32xf32>
    %165 = arith.truncf %164 : vector<8x32xf32> to vector<8x32xbf16>
    %c0_89 = arith.constant 0 : index
    %c0_90 = arith.constant 0 : index
    %166 = vector.load %arg13[%c0_89, %c0_90] : memref<1x32xf32, #tpu.memory_space<vmem>>, vector<1x32xf32>
    %167 = vector.broadcast %166 : vector<1x32xf32> to vector<8x32xf32>
    %168 = arith.addf %140, %167 : vector<8x32xf32>
    %c0_91 = arith.constant 0 : index
    %c0_92 = arith.constant 0 : index
    %169 = vector.load %arg17[%c0_91, %c0_92] : memref<8x32xf32, #tpu.memory_space<vmem>>, vector<8x32xf32>
    tpu.vector_store %arg17[%c0_91, %c0_92], %168 {strides = array<i32>} : memref<8x32xf32, #tpu.memory_space<vmem>>, vector<8x32xf32>,
    %c0_93 = arith.constant 0 : index
    %c0_94 = arith.constant 0 : index
    %170 = vector.load %arg10[%c0_93, %c0_94] : memref<32x128xbf16, #tpu.memory_space<vmem>>, vector<32x128xbf16>
    %cst_95 = arith.constant dense<0.000000e+00> : vector<8x128xf32>
    %171 = tpu.matmul %165, %170, %cst_95 {dimension_numbers = #tpu.dot_dimension_numbers<[1], [0], [0], [1], [0, 0, 1, 1], [], []>} : vector<8x32xbf16>, vector<32x128xbf16>, vector<8x128xf32> -> vector<8x128xf32>
    %c0_96 = arith.constant 0 : index
    %c0_97 = arith.constant 0 : index
    %172 = vector.load %arg11[%c0_96, %c0_97] : memref<1x128xf32, #tpu.memory_space<vmem>>, vector<1x128xf32>
    %173 = vector.broadcast %172 : vector<1x128xf32> to vector<8x128xf32>
    %174 = arith.addf %171, %173 : vector<8x128xf32>
    %cst_98 = arith.constant 5.000000e-01 : f32
    %175 = vector.broadcast %cst_98 : f32 to vector<8x128xf32>
    %176 = arith.mulf %175, %174 : vector<8x128xf32>
    %177 = arith.mulf %174, %174 : vector<8x128xf32>
    %178 = arith.mulf %177, %174 : vector<8x128xf32>
    %cst_99 = arith.constant 4.471500e-02 : f32
    %179 = vector.broadcast %cst_99 : f32 to vector<8x128xf32>
    %180 = arith.mulf %179, %178 : vector<8x128xf32>
    %181 = arith.addf %174, %180 : vector<8x128xf32>
    %cst_100 = arith.constant 0.797884583 : f32
    %182 = vector.broadcast %cst_100 : f32 to vector<8x128xf32>
    %183 = arith.mulf %182, %181 : vector<8x128xf32>
    %184 = math.tanh %183 : vector<8x128xf32>
    %cst_101 = arith.constant 1.000000e+00 : f32
    %185 = vector.broadcast %cst_101 : f32 to vector<8x128xf32>
    %186 = arith.addf %185, %184 : vector<8x128xf32>
    %187 = arith.mulf %176, %186 : vector<8x128xf32>
    %c0_102 = arith.constant 0 : index
    %c0_103 = arith.constant 0 : index
    %188 = vector.load %arg17[%c0_102, %c0_103] : memref<8x32xf32, #tpu.memory_space<vmem>>, vector<8x32xf32>
    %189 = arith.truncf %187 : vector<8x128xf32> to vector<8x128xbf16>
    %c0_104 = arith.constant 0 : index
    %c0_105 = arith.constant 0 : index
    %190 = vector.load %arg12[%c0_104, %c0_105] : memref<128x32xbf16, #tpu.memory_space<vmem>>, vector<128x32xbf16>
    %cst_106 = arith.constant dense<0.000000e+00> : vector<8x32xf32>
    %191 = tpu.matmul %189, %190, %cst_106 {dimension_numbers = #tpu.dot_dimension_numbers<[1], [0], [0], [1], [0, 0, 1, 1], [], []>} : vector<8x128xbf16>, vector<128x32xbf16>, vector<8x32xf32> -> vector<8x32xf32>
    %192 = arith.addf %188, %191 : vector<8x32xf32>
    %c0_107 = arith.constant 0 : index
    %c0_108 = arith.constant 0 : index
    %193 = vector.load %arg17[%c0_107, %c0_108] : memref<8x32xf32, #tpu.memory_space<vmem>>, vector<8x32xf32>
    tpu.vector_store %arg17[%c0_107, %c0_108], %192 {strides = array<i32>} : memref<8x32xf32, #tpu.memory_space<vmem>>, vector<8x32xf32>,
    %c0_109 = arith.constant 0 : index
    %c0_110 = arith.constant 0 : index
    %194 = vector.load %arg17[%c0_109, %c0_110] : memref<8x32xf32, #tpu.memory_space<vmem>>, vector<8x32xf32>
    %c0_111 = arith.constant 0 : index
    %c0_112 = arith.constant 0 : index
    %c0_113 = arith.constant 0 : index
    %195 = vector.load %arg14[%c0_111, %c0_112, %c0_113] : memref<1x8x32xf32, #tpu.memory_space<vmem>>, vector<1x8x32xf32>
    %196 = vector.shape_cast %195 : vector<1x8x32xf32> to vector<8x32xf32>
    %197 = vector.shape_cast %194 : vector<8x32xf32> to vector<1x8x32xf32>
    tpu.vector_store %arg14[%c0_111, %c0_112, %c0_113], %197 {strides = array<i32>} : memref<1x8x32xf32, #tpu.memory_space<vmem>>, vector<1x8x32xf32>,
    return
  }
  func.func @transform_0(%arg0: i32) -> (i32, i32, i32) {
    %c0_i32 = arith.constant 0 : i32
    %c0_i32_0 = arith.constant 0 : i32
    %c0_i32_1 = arith.constant 0 : i32
    return %arg0, %c0_i32, %c0_i32_0 : i32, i32, i32
  }
  func.func @transform_1(%arg0: i32) -> (i32, i32) {
    %c0_i32 = arith.constant 0 : i32
    %c0_i32_0 = arith.constant 0 : i32
    %c0_i32_1 = arith.constant 0 : i32
    return %c0_i32, %c0_i32_0 : i32, i32
  }
  func.func @transform_2(%arg0: i32) -> (i32, i32) {
    %c0_i32 = arith.constant 0 : i32
    %c0_i32_0 = arith.constant 0 : i32
    %c0_i32_1 = arith.constant 0 : i32
    return %c0_i32, %c0_i32_0 : i32, i32
  }
  func.func @transform_3(%arg0: i32) -> (i32, i32) {
    %c0_i32 = arith.constant 0 : i32
    %c0_i32_0 = arith.constant 0 : i32
    %c0_i32_1 = arith.constant 0 : i32
    return %c0_i32, %c0_i32_0 : i32, i32
  }
  func.func @transform_4(%arg0: i32) -> (i32, i32) {
    %c0_i32 = arith.constant 0 : i32
    %c0_i32_0 = arith.constant 0 : i32
    %c0_i32_1 = arith.constant 0 : i32
    return %c0_i32, %c0_i32_0 : i32, i32
  }
  func.func @transform_5(%arg0: i32) -> (i32, i32) {
    %c0_i32 = arith.constant 0 : i32
    %c0_i32_0 = arith.constant 0 : i32
    %c0_i32_1 = arith.constant 0 : i32
    return %c0_i32, %c0_i32_0 : i32, i32
  }
  func.func @transform_6(%arg0: i32) -> (i32, i32) {
    %c0_i32 = arith.constant 0 : i32
    %c0_i32_0 = arith.constant 0 : i32
    %c0_i32_1 = arith.constant 0 : i32
    return %c0_i32, %c0_i32_0 : i32, i32
  }
  func.func @transform_7(%arg0: i32) -> (i32, i32) {
    %c0_i32 = arith.constant 0 : i32
    %c0_i32_0 = arith.constant 0 : i32
    %c0_i32_1 = arith.constant 0 : i32
    return %c0_i32, %c0_i32_0 : i32, i32
  }
  func.func @transform_8(%arg0: i32) -> (i32, i32) {
    %c0_i32 = arith.constant 0 : i32
    %c0_i32_0 = arith.constant 0 : i32
    %c0_i32_1 = arith.constant 0 : i32
    return %c0_i32, %c0_i32_0 : i32, i32
  }
  func.func @transform_9(%arg0: i32) -> (i32, i32) {
    %c0_i32 = arith.constant 0 : i32
    %c0_i32_0 = arith.constant 0 : i32
    %c0_i32_1 = arith.constant 0 : i32
    return %c0_i32, %c0_i32_0 : i32, i32
  }
  func.func @transform_10(%arg0: i32) -> (i32, i32) {
    %c0_i32 = arith.constant 0 : i32
    %c0_i32_0 = arith.constant 0 : i32
    %c0_i32_1 = arith.constant 0 : i32
    return %c0_i32, %c0_i32_0 : i32, i32
  }
  func.func @transform_11(%arg0: i32) -> (i32, i32) {
    %c0_i32 = arith.constant 0 : i32
    %c0_i32_0 = arith.constant 0 : i32
    %c0_i32_1 = arith.constant 0 : i32
    return %c0_i32, %c0_i32_0 : i32, i32
  }
  func.func @transform_12(%arg0: i32) -> (i32, i32) {
    %c0_i32 = arith.constant 0 : i32
    %c0_i32_0 = arith.constant 0 : i32
    %c0_i32_1 = arith.constant 0 : i32
    return %c0_i32, %c0_i32_0 : i32, i32
  }
  func.func @transform_13(%arg0: i32) -> (i32, i32, i32) {
    %c0_i32 = arith.constant 0 : i32
    %c0_i32_0 = arith.constant 0 : i32
    %c0_i32_1 = arith.constant 0 : i32
    return %arg0, %c0_i32, %c0_i32_0 : i32, i32, i32
  }
}

</mosaic_0001>

<bundles_post_ra>
// kernel: tpu_custom_call.1
= control target key start
LH: loop header
LB: loop body
LE: loop exit
PB: predicated region body
PF: predicated region fallthrough
CT: control target
= control target key end

     0   :  { %s3468_s0 = inlined_call_operand.hbm [shape: f32[2,8,32], index: 0, kind: input, shape index: {}]   ;;  %s3469_s1 = inlined_call_operand.hbm [shape: f32[1,32], index: 1, kind: input, shape index: {}]   ;;  %s3470_s2 = inlined_call_operand.hbm [shape: f32[1,32], index: 2, kind: input, shape index: {}]   ;;  %s3471_s3 = inlined_call_operand.hbm [shape: bf16[32,96], index: 3, kind: input, shape index: {}]   ;;  %s3472_s4 = inlined_call_operand.hbm [shape: f32[1,96], index: 4, kind: input, shape index: {}]   ;;  %s3473_s5 = inlined_call_operand.hbm [shape: bf16[32,32], index: 5, kind: input, shape index: {}]   ;;  %s3474_s6 = inlined_call_operand.hbm [shape: f32[1,32], index: 6, kind: input, shape index: {}]   ;;  %s3475_s7 = inlined_call_operand.hbm [shape: f32[1,32], index: 7, kind: input, shape index: {}]   ;;  %s3476_s8 = inlined_call_operand.hbm [shape: f32[1,32], index: 8, kind: input, shape index: {}]   ;;  %s3477_s9 = inlined_call_operand.hbm [shape: bf16[32,128], index: 9, kind: input, shape index: {}]   ;;  %s3478_s10 = inlined_call_operand.hbm [shape: f32[1,128], index: 10, kind: input, shape index: {}]   ;;  %s3479_s11 = inlined_call_operand.hbm [shape: bf16[128,32], index: 11, kind: input, shape index: {}]   ;;  %s3480_s12 = inlined_call_operand.hbm [shape: f32[1,32], index: 12, kind: input, shape index: {}]   ;;  %s3481_s13 = inlined_call_operand.hbm [shape: f32[2,8,32], index: 13, kind: output, shape index: {}]  }
   0x1   :  { %3491 = sst [smem:[#allocation37_spill]] %s3468_s0 }
   0x2   :  { %3492 = sst [smem:[#allocation38_spill]] %s3469_s1 }
   0x3   :  { %3493 = sst [smem:[#allocation39_spill]] %s3470_s2 }
   0x4   :  { %3494 = sst [smem:[#allocation40_spill]] %s3471_s3 }
   0x5   :  { %3495 = sst [smem:[#allocation41_spill]] %s3481_s13 }
   0x6   :  { %18 = vsyncpa [#allocation6], 0 }
   0x7   :  { %20 = vsyncpa [#allocation6 + $0x1], 0 }
   0x8   :  { %21 = vsyncpa [#allocation9], 0 }
   0x9   :  { %22 = vsyncpa [#allocation12], 0 }
   0xa   :  { %23 = vsyncpa [#allocation15], 0 }
   0xb   :  { %24 = vsyncpa [#allocation18], 0 }
   0xc   :  { %25 = vsyncpa [#allocation21], 0 }
   0xd   :  { %26 = vsyncpa [#allocation24], 0 }
   0xe   :  { %27 = vsyncpa [#allocation7], 0 }
   0xf   :  { %29 = vsyncpa [#allocation7 + $0x1], 0  ;;  %s2888_s25 = smov 0   ;;  %s2890_s26 = smov 0  }
  0x10   :  { %s2892_s27 = smov 0   ;;  %s2894_s28 = smov 0  }
  0x11 LB: > { %s2784_s29 = smov [#allocation8]   ;;  %s2909_s14 = sadd.s32 4294967295, %s2782_s28   ;;  %s2782_s28 = sphi %s2894_s28, %s3534_s28   ;;  %s2778_s27 = sphi %s2892_s27, %s3533_s27   ;;  %s2774_s26 = sphi %s2890_s26, %s3532_s26   ;;  %s2770_s25 = sphi %s2888_s25, %s3531_s25  }
  0x12   : > { %s357_s30 = sshll.u32 %s2784_s29, 4  ;;  %3496 = sst [smem:[#allocation35_spill]] %s2909_s14  ;;  %s2914_s30 = int_to_ptr.vmem [resolvable:$true] %s357_s30 }
  0x13   : > { %p1857_p0 = scmp.ge.s32.totalorder %s2782_s28, 1  ;;  %p3488_p1 = scmp.eq.s32.totalorder %s2909_s14, 0 }
  0x14   : > { %p344_p2 = scmp.lt.s32.totalorder %s2782_s28, 3  ;;  %s2785_s16 = smov [#allocation11]  }
  0x15   : > { %s378_s17 = sshll.u32 %s2785_s16, 4  ;;  %s2786_s19 = smov [#allocation14]   ;;  %s2923_s17 = int_to_ptr.vmem [resolvable:$true] %s378_s17 }
  0x16   : > { %p2916_p3 = pnand %p1857_p0, %p344_p2  ;;  %s402_s20 = sshll.u32 %s2786_s19, 4  ;;  %s2931_s20 = int_to_ptr.vmem [resolvable:$true] %s402_s20 }
  0x17   : > { %s3500_s1 = sld [smem:[#allocation38_spill]] }
  0x18   : > { %s3497_s15 = scalar_select %p2916_p3, 1, 0 }
  0x19   : > { %p2147_p5 = pneg %p2916_p3 }
  0x1a   : > { %3498 = sst [smem:[#allocation36_spill]] %s3497_s15 }
  0x1b   : > { %p2927_p6 = pnand %p2147_p5, %p3488_p1 }
  0x1d   : > { %s2326_s23 = scalar_lea.hbm %s3500_s1, 16  ;;  %p2941_p8 = pneg %p2927_p6 }
  0x1e   : > { %p2327_p7 = scmp.ne.s32.totalorder %s3500_s1, %s2326_s23  ;;  %p2333_p11 = scmp.lt.u32.totalorder %s2326_s23, %s3500_s1 }
  0x20   : > { %p2329_p9 = pnand %p2941_p8, %p2327_p7 }
  0x22   : > { %p2330_p10 = pneg %p2329_p9 }
  0x24   : > { %p2335_p12 = pnand %p2333_p11, %p2330_p10 }
  0x26   : > { %2338 = shalt.err (!%p2335_p12)
}
  0x27   : > { %s2339_s21 = scalar_lea.vmem %s2914_s30, 16  ;;  %s2346_s22 = scalar_lea.vmem %s2914_s30, 32 }
  0x28   : > { %p2340_p13 = scmp.ne.s32.totalorder %s2914_s30, %s2339_s21  ;;  %p2347_p5 = scmp.lt.s32.totalorder %s2914_s30, %s2914_s30 }
  0x29   : > { %p2348_p7 = scmp.lt.s32.totalorder %s2346_s22, %s2339_s21 }
  0x2a   : > { %p2342_p0 = pnand %p2340_p13, %p2941_p8 }
  0x2b   : > { %p2349_p9 = por %p2348_p7, %p2347_p5 }
  0x2c   : > { %p2343_p2 = pneg %p2342_p0 }
  0x2e   : > { %p2350_p4 = pnand %p2349_p9, %p2343_p2 }
  0x30   : > { %2353 = shalt.err (!%p2350_p4)
}
  0x31   : > { %2150 = dma.hbm_to_vmem [thread:$0]  (!%p2927_p6), %s3500_s1, 16, %s2914_s30, [#allocation9]  }
  0x32   : > { %s3502_s3 = sld [smem:[#allocation40_spill]] }
  0x38   : > { %s2354_s19 = scalar_lea.hbm %s3502_s3, 256 }
  0x39   : > { %p2355_p10 = scmp.ne.s32.totalorder %s3502_s3, %s2354_s19  ;;  %p2361_p4 = scmp.lt.u32.totalorder %s2354_s19, %s3502_s3 }
  0x3b   : > { %p2357_p11 = pnand %p2355_p10, %p2941_p8 }
  0x3d   : > { %p2358_p12 = pneg %p2357_p11 }
  0x3f   : > { %p2363_p13 = pnand %p2361_p4, %p2358_p12 }
  0x41   : > { %2366 = shalt.err (!%p2363_p13)
}
  0x42   : > { %s2367_s30 = scalar_lea.vmem %s2923_s17, 256  ;;  %p2375_p7 = scmp.lt.s32.totalorder %s2923_s17, %s2923_s17 }
  0x43   : > { %p2368_p0 = scmp.ne.s32.totalorder %s2923_s17, %s2367_s30  ;;  %p2376_p9 = scmp.lt.s32.totalorder %s2367_s30, %s2367_s30 }
  0x45   : > { %p2370_p2 = pnand %p2368_p0, %p2941_p8  ;;  %p2377_p10 = por %p2376_p9, %p2375_p7 }
  0x47   : > { %p2371_p5 = pneg %p2370_p2 }
  0x49   : > { %p2378_p11 = pnand %p2377_p10, %p2371_p5 }
  0x4b   : > { %2381 = shalt.err (!%p2378_p11)
}
  0x4c   : > { %s2787_s0 = smov 64   ;;  %s2788_s15 = smov 4  }
  0x4d   : > { %2156 = dma.hbm_to_vmem [thread:$0]  (!%p2927_p6), %s3502_s3, 256, %s2923_s17, [#allocation12], %s2787_s0, %s2787_s0, %s2788_s15  }
  0x4e   : > { %s2382_s19 = scalar_lea.hbm %s3473_s5, 256 }
  0x4f   : > { %p2383_p12 = scmp.ne.s32.totalorder %s3473_s5, %s2382_s19  ;;  %p2389_p0 = scmp.lt.u32.totalorder %s2382_s19, %s3473_s5 }
  0x51   : > { %p2385_p4 = pnand %p2383_p12, %p2941_p8 }
  0x53   : > { %p2386_p13 = pneg %p2385_p4 }
  0x55   : > { %p2391_p2 = pnand %p2389_p0, %p2386_p13 }
  0x57   : > { %2394 = shalt.err (!%p2391_p2)
}
  0x58   : > { %s2395_s17 = scalar_lea.vmem %s2931_s20, 256  ;;  %p2403_p10 = scmp.lt.s32.totalorder %s2931_s20, %s2931_s20 }
  0x59   : > { %p2396_p5 = scmp.ne.s32.totalorder %s2931_s20, %s2395_s17  ;;  %p2404_p11 = scmp.lt.s32.totalorder %s2395_s17, %s2395_s17 }
  0x5b   : > { %p2398_p7 = pnand %p2396_p5, %p2941_p8  ;;  %p2405_p12 = por %p2404_p11, %p2403_p10 }
  0x5d   : > { %p2399_p9 = pneg %p2398_p7 }
  0x5f   : > { %p2406_p4 = pnand %p2405_p12, %p2399_p9 }
  0x61   : > { %2409 = shalt.err (!%p2406_p4)
}
  0x62   : > { %2162 = dma.hbm_to_vmem [thread:$0]  (!%p2927_p6), %s3473_s5, 256, %s2931_s20, [#allocation15], %s2787_s0, %s2787_s0, %s2788_s15  }
  0x63   : > { %s2789_s23 = smov [#allocation17]   ;;  %s2790_s29 = smov [#allocation20]  }
  0x64   : > { %s427_s24 = sshll.u32 %s2789_s23, 4  ;;  %s448_s19 = sshll.u32 %s2790_s29, 4  ;;  %s428_s24 = int_to_ptr.vmem [resolvable:$true] %s427_s24  ;;  %s449_s19 = int_to_ptr.vmem [resolvable:$true] %s448_s19 }
  0x65   : > { %s2410_s30 = scalar_lea.hbm %s3475_s7, 16 }
  0x66   : > { %p2411_p13 = scmp.ne.s32.totalorder %s3475_s7, %s2410_s30  ;;  %p2417_p5 = scmp.lt.u32.totalorder %s2410_s30, %s3475_s7 }
  0x68   : > { %p2413_p0 = pnand %p2411_p13, %p2941_p8 }
  0x6a   : > { %p2414_p2 = pneg %p2413_p0 }
  0x6c   : > { %p2419_p7 = pnand %p2417_p5, %p2414_p2 }
  0x6e   : > { %2422 = shalt.err (!%p2419_p7)
}
  0x6f   : > { %s2423_s20 = scalar_lea.vmem %s428_s24, 16  ;;  %s2430_s13 = scalar_lea.vmem %s428_s24, 32 }
  0x70   : > { %p2424_p9 = scmp.ne.s32.totalorder %s428_s24, %s2423_s20  ;;  %p2431_p12 = scmp.lt.s32.totalorder %s428_s24, %s428_s24 }
  0x71   : > { %p2432_p4 = scmp.lt.s32.totalorder %s2430_s13, %s2423_s20 }
  0x72   : > { %p2426_p10 = pnand %p2424_p9, %p2941_p8 }
  0x73   : > { %p2433_p1 = por %p2432_p4, %p2431_p12 }
  0x74   : > { %p2427_p11 = pneg %p2426_p10 }
  0x76   : > { %p2434_p3 = pnand %p2433_p1, %p2427_p11 }
  0x78   : > { %2437 = shalt.err (!%p2434_p3)
}
  0x79   : > { %2168 = dma.hbm_to_vmem [thread:$0]  (!%p2927_p6), %s3475_s7, 16, %s428_s24, [#allocation18]  }
  0x7a   : > { %s2438_s21 = scalar_lea.hbm %s3477_s9, 256 }
  0x7b   : > { %p2439_p13 = scmp.ne.s32.totalorder %s3477_s9, %s2438_s21  ;;  %p2445_p3 = scmp.lt.u32.totalorder %s2438_s21, %s3477_s9 }
  0x7d   : > { %p2441_p0 = pnand %p2439_p13, %p2941_p8 }
  0x7f   : > { %p2442_p1 = pneg %p2441_p0 }
  0x81   : > { %p2447_p2 = pnand %p2445_p3, %p2442_p1 }
  0x83   : > { %2450 = shalt.err (!%p2447_p2)
}
  0x84   : > { %s2451_s20 = scalar_lea.vmem %s449_s19, 256  ;;  %p2459_p10 = scmp.lt.s32.totalorder %s449_s19, %s449_s19 }
  0x85   : > { %p2452_p5 = scmp.ne.s32.totalorder %s449_s19, %s2451_s20  ;;  %p2460_p11 = scmp.lt.s32.totalorder %s2451_s20, %s2451_s20 }
  0x87   : > { %p2454_p7 = pnand %p2452_p5, %p2941_p8  ;;  %p2461_p12 = por %p2460_p11, %p2459_p10 }
  0x89   : > { %p2455_p9 = pneg %p2454_p7 }
  0x8b   : > { %p2462_p4 = pnand %p2461_p12, %p2455_p9 }
  0x8d   : > { %2465 = shalt.err (!%p2462_p4)
}
  0x8e   : > { %2174 = dma.hbm_to_vmem [thread:$0]  (!%p2927_p6), %s3477_s9, 256, %s449_s19, [#allocation21], %s2787_s0, %s2787_s0, %s2788_s15  }
  0x8f   : > { %s2791_s3 = smov [#allocation23]   ;;  %s2792_s14 = smov [#allocation10]  }
  0x90   : > { %s472_s23 = sshll.u32 %s2791_s3, 4  ;;  %s368_s29 = sshll.u32 %s2792_s14, 4  ;;  %s473_s23 = int_to_ptr.vmem [resolvable:$true] %s472_s23  ;;  %s369_s29 = int_to_ptr.vmem [resolvable:$true] %s368_s29 }
  0x91   : > { %s2466_s30 = scalar_lea.hbm %s3479_s11, 1024 }
  0x92   : > { %p2467_p13 = scmp.ne.s32.totalorder %s3479_s11, %s2466_s30  ;;  %p2473_p3 = scmp.lt.u32.totalorder %s2466_s30, %s3479_s11 }
  0x94   : > { %p2469_p0 = pnand %p2467_p13, %p2941_p8 }
  0x96   : > { %p2470_p1 = pneg %p2469_p0 }
  0x98   : > { %p2475_p2 = pnand %p2473_p3, %p2470_p1 }
  0x9a   : > { %2478 = shalt.err (!%p2475_p2)
}
  0x9b   : > { %s2479_s19 = scalar_lea.vmem %s473_s23, 1024  ;;  %p2487_p10 = scmp.lt.s32.totalorder %s473_s23, %s473_s23 }
  0x9c   : > { %p2480_p5 = scmp.ne.s32.totalorder %s473_s23, %s2479_s19  ;;  %p2488_p11 = scmp.lt.s32.totalorder %s2479_s19, %s2479_s19 }
  0x9e   : > { %p2482_p7 = pnand %p2480_p5, %p2941_p8  ;;  %p2489_p12 = por %p2488_p11, %p2487_p10 }
  0xa0   : > { %p2483_p9 = pneg %p2482_p7 }
  0xa2   : > { %p2490_p4 = pnand %p2489_p12, %p2483_p9 }
  0xa4   : > { %2493 = shalt.err (!%p2490_p4)
}
  0xa5   : > { %2180 = dma.hbm_to_vmem [thread:$0]  (!%p2927_p6), %s3479_s11, 1024, %s473_s23, [#allocation24], %s2787_s0, %s2787_s0, %s2788_s15  }
  0xa6   : > { %s3503_s2 = sld [smem:[#allocation39_spill]] }
  0xac   : > { %s2494_s22 = scalar_lea.hbm %s3503_s2, 16 }
  0xad   : > { %p2495_p13 = scmp.ne.s32.totalorder %s3503_s2, %s2494_s22  ;;  %p2501_p3 = scmp.lt.u32.totalorder %s2494_s22, %s3503_s2 }
  0xaf   : > { %p2497_p0 = pnand %p2495_p13, %p2941_p8 }
  0xb1   : > { %p2498_p1 = pneg %p2497_p0 }
  0xb3   : > { %p2503_p2 = pnand %p2501_p3, %p2498_p1 }
  0xb5   : > { %2506 = shalt.err (!%p2503_p2)
}
  0xb6   : > { %s2507_s24 = scalar_lea.vmem %s369_s29, 16  ;;  %s2514_s0 = scalar_lea.vmem %s369_s29, 32 }
  0xb7   : > { %p2508_p5 = scmp.ne.s32.totalorder %s369_s29, %s2507_s24  ;;  %p2515_p10 = scmp.lt.s32.totalorder %s369_s29, %s369_s29 }
  0xb8   : > { %p2516_p11 = scmp.lt.s32.totalorder %s2514_s0, %s2507_s24 }
  0xb9   : > { %p2510_p7 = pnand %p2508_p5, %p2941_p8 }
  0xba   : > { %p2517_p12 = por %p2516_p11, %p2515_p10 }
  0xbb   : > { %p2511_p9 = pneg %p2510_p7 }
  0xbd   : > { %p2518_p4 = pnand %p2517_p12, %p2511_p9 }
  0xbf   : > { %2521 = shalt.err (!%p2518_p4)
}
  0xc0   : > { %2153 = dma.hbm_to_vmem [thread:$0]  (!%p2927_p6), %s3503_s2, 16, %s369_s29, [#allocation9]  }
  0xc1   : > { %s2793_s19 = smov [#allocation13]   ;;  %s2794_s3 = smov [#allocation16]  }
  0xc2   : > { %s392_s13 = sshll.u32 %s2793_s19, 4  ;;  %s416_s14 = sshll.u32 %s2794_s3, 4  ;;  %s393_s13 = int_to_ptr.vmem [resolvable:$true] %s392_s13  ;;  %s417_s14 = int_to_ptr.vmem [resolvable:$true] %s416_s14 }
  0xc3   : > { %s2522_s30 = scalar_lea.hbm %s3472_s4, 16 }
  0xc4   : > { %p2523_p13 = scmp.ne.s32.totalorder %s3472_s4, %s2522_s30  ;;  %p2529_p3 = scmp.lt.u32.totalorder %s2522_s30, %s3472_s4 }
  0xc6   : > { %p2525_p0 = pnand %p2523_p13, %p2941_p8 }
  0xc8   : > { %p2526_p1 = pneg %p2525_p0 }
  0xca   : > { %p2531_p2 = pnand %p2529_p3, %p2526_p1 }
  0xcc   : > { %2534 = shalt.err (!%p2531_p2)
}
  0xcd   : > { %s2535_s29 = scalar_lea.vmem %s393_s13, 16  ;;  %s2542_s0 = scalar_lea.vmem %s393_s13, 32 }
  0xce   : > { %p2536_p5 = scmp.ne.s32.totalorder %s393_s13, %s2535_s29  ;;  %p2543_p10 = scmp.lt.s32.totalorder %s393_s13, %s393_s13 }
  0xcf   : > { %p2544_p11 = scmp.lt.s32.totalorder %s2542_s0, %s2535_s29 }
  0xd0   : > { %p2538_p7 = pnand %p2536_p5, %p2941_p8 }
  0xd1   : > { %p2545_p12 = por %p2544_p11, %p2543_p10 }
  0xd2   : > { %p2539_p9 = pneg %p2538_p7 }
  0xd4   : > { %p2546_p4 = pnand %p2545_p12, %p2539_p9 }
  0xd6   : > { %2549 = shalt.err (!%p2546_p4)
}
  0xd7   : > { %2159 = dma.hbm_to_vmem [thread:$0]  (!%p2927_p6), %s3472_s4, 16, %s393_s13, [#allocation12]  }
  0xd8   : > { %s2550_s21 = scalar_lea.hbm %s3474_s6, 16 }
  0xd9   : > { %p2551_p13 = scmp.ne.s32.totalorder %s3474_s6, %s2550_s21  ;;  %p2557_p3 = scmp.lt.u32.totalorder %s2550_s21, %s3474_s6 }
  0xdb   : > { %p2553_p0 = pnand %p2551_p13, %p2941_p8 }
  0xdd   : > { %p2554_p1 = pneg %p2553_p0 }
  0xdf   : > { %p2559_p2 = pnand %p2557_p3, %p2554_p1 }
  0xe1   : > { %2562 = shalt.err (!%p2559_p2)
}
  0xe2   : > { %s2563_s20 = scalar_lea.vmem %s417_s14, 16  ;;  %s2570_s13 = scalar_lea.vmem %s417_s14, 32 }
  0xe3   : > { %p2564_p5 = scmp.ne.s32.totalorder %s417_s14, %s2563_s20  ;;  %p2571_p10 = scmp.lt.s32.totalorder %s417_s14, %s417_s14 }
  0xe4   : > { %p2572_p11 = scmp.lt.s32.totalorder %s2570_s13, %s2563_s20 }
  0xe5   : > { %p2566_p7 = pnand %p2564_p5, %p2941_p8 }
  0xe6   : > { %p2573_p12 = por %p2572_p11, %p2571_p10 }
  0xe7   : > { %p2567_p9 = pneg %p2566_p7 }
  0xe9   : > { %p2574_p4 = pnand %p2573_p12, %p2567_p9 }
  0xeb   : > { %2577 = shalt.err (!%p2574_p4)
}
  0xec   : > { %2165 = dma.hbm_to_vmem [thread:$0]  (!%p2927_p6), %s3474_s6, 16, %s417_s14, [#allocation15]  }
  0xed   : > { %s2795_s0 = smov [#allocation19]   ;;  %s2796_s23 = smov [#allocation22]  }
  0xee   : > { %s438_s15 = sshll.u32 %s2795_s0, 4  ;;  %s462_s19 = sshll.u32 %s2796_s23, 4  ;;  %s439_s15 = int_to_ptr.vmem [resolvable:$true] %s438_s15  ;;  %s463_s19 = int_to_ptr.vmem [resolvable:$true] %s462_s19 }
  0xef   : > { %s2578_s22 = scalar_lea.hbm %s3476_s8, 16 }
  0xf0   : > { %p2579_p13 = scmp.ne.s32.totalorder %s3476_s8, %s2578_s22  ;;  %p2585_p3 = scmp.lt.u32.totalorder %s2578_s22, %s3476_s8 }
  0xf2   : > { %p2581_p0 = pnand %p2579_p13, %p2941_p8 }
  0xf4   : > { %p2582_p1 = pneg %p2581_p0 }
  0xf6   : > { %p2587_p2 = pnand %p2585_p3, %p2582_p1 }
  0xf8   : > { %2590 = shalt.err (!%p2587_p2)
}
  0xf9   : > { %s2591_s14 = scalar_lea.vmem %s439_s15, 16  ;;  %s2598_s13 = scalar_lea.vmem %s439_s15, 32 }
  0xfa   : > { %p2592_p5 = scmp.ne.s32.totalorder %s439_s15, %s2591_s14  ;;  %p2599_p10 = scmp.lt.s32.totalorder %s439_s15, %s439_s15 }
  0xfb   : > { %p2600_p11 = scmp.lt.s32.totalorder %s2598_s13, %s2591_s14 }
  0xfc   : > { %p2594_p7 = pnand %p2592_p5, %p2941_p8 }
  0xfd   : > { %p2601_p12 = por %p2600_p11, %p2599_p10 }
  0xfe   : > { %p2595_p9 = pneg %p2594_p7 }
 0x100   : > { %p2602_p4 = pnand %p2601_p12, %p2595_p9 }
 0x102   : > { %2605 = shalt.err (!%p2602_p4)
}
 0x103   : > { %2171 = dma.hbm_to_vmem [thread:$0]  (!%p2927_p6), %s3476_s8, 16, %s439_s15, [#allocation18]  }
 0x104   : > { %s2606_s3 = scalar_lea.hbm %s3478_s10, 16 }
 0x105   : > { %p2607_p13 = scmp.ne.s32.totalorder %s3478_s10, %s2606_s3  ;;  %p2613_p3 = scmp.lt.u32.totalorder %s2606_s3, %s3478_s10 }
 0x107   : > { %p2609_p0 = pnand %p2607_p13, %p2941_p8 }
 0x109   : > { %p2610_p1 = pneg %p2609_p0 }
 0x10b   : > { %p2615_p2 = pnand %p2613_p3, %p2610_p1 }
 0x10d   : > { %2618 = shalt.err (!%p2615_p2)
}
 0x10e   : > { %s2619_s1 = scalar_lea.vmem %s463_s19, 16  ;;  %s2626_s15 = scalar_lea.vmem %s463_s19, 32 }
 0x10f   : > { %p2620_p5 = scmp.ne.s32.totalorder %s463_s19, %s2619_s1  ;;  %p2627_p10 = scmp.lt.s32.totalorder %s463_s19, %s463_s19 }
 0x110   : > { %p2628_p11 = scmp.lt.s32.totalorder %s2626_s15, %s2619_s1 }
 0x111   : > { %p2622_p7 = pnand %p2620_p5, %p2941_p8 }
 0x112   : > { %p2629_p12 = por %p2628_p11, %p2627_p10 }
 0x113   : > { %p2623_p9 = pneg %p2622_p7 }
 0x115   : > { %p2630_p4 = pnand %p2629_p12, %p2623_p9 }
 0x117   : > { %2633 = shalt.err (!%p2630_p4)
}
 0x118   : > { %2177 = dma.hbm_to_vmem [thread:$0]  (!%p2927_p6), %s3478_s10, 16, %s463_s19, [#allocation21]  }
 0x119   : > { %s2797_s13 = smov [#allocation25]   ;;  %s2634_s23 = scalar_lea.hbm %s3480_s12, 16 }
 0x11a   : > { %s486_s24 = sshll.u32 %s2797_s13, 4  ;;  %p2635_p13 = scmp.ne.s32.totalorder %s3480_s12, %s2634_s23  ;;  %s487_s24 = int_to_ptr.vmem [resolvable:$true] %s486_s24 }
 0x11b   : > { %p2641_p3 = scmp.lt.u32.totalorder %s2634_s23, %s3480_s12 }
 0x11c   : > { %p2637_p0 = pnand %p2635_p13, %p2941_p8 }
 0x11e   : > { %p2638_p1 = pneg %p2637_p0 }
 0x120   : > { %p2643_p2 = pnand %p2641_p3, %p2638_p1 }
 0x122   : > { %2646 = shalt.err (!%p2643_p2)
}
 0x123   : > { %s2647_s19 = scalar_lea.vmem %s487_s24, 16  ;;  %s2654_s17 = scalar_lea.vmem %s487_s24, 32 }
 0x124   : > { %p2648_p5 = scmp.ne.s32.totalorder %s487_s24, %s2647_s19  ;;  %p2655_p10 = scmp.lt.s32.totalorder %s487_s24, %s487_s24 }
 0x125   : > { %p2656_p11 = scmp.lt.s32.totalorder %s2654_s17, %s2647_s19 }
 0x126   : > { %p2650_p7 = pnand %p2648_p5, %p2941_p8 }
 0x127   : > { %p2657_p12 = por %p2656_p11, %p2655_p10 }
 0x128   : > { %p2651_p9 = pneg %p2650_p7 }
 0x12a   : > { %p2658_p4 = pnand %p2657_p12, %p2651_p9 }
 0x12c   : > { %2661 = shalt.err (!%p2658_p4)
}
 0x12d   : > { %s3504_s16 = sld [smem:[#allocation35_spill]]  ;;  %s1856_s20 = sadd.s32 4294967294, %s2782_s28  }
 0x12e   : > { %2183 = dma.hbm_to_vmem [thread:$0]  (!%p2927_p6), %s3480_s12, 16, %s487_s24, [#allocation24]  }
 0x12f   : > { %s3185_s18 = sadd.s32 1, %s2782_s28   ;;  %s42_s13 = sadd.s32 1, %s2778_s27 }
 0x130   : > { %s39_s14 = ssub.s32 %s2782_s28, %s3185_s18  ;;  %p49_p13 = scmp.ne.s32.totalorder %s2778_s27, %s2774_s26 }
 0x131   : > { %p40_p8 = scmp.eq.s32.totalorder %s39_s14, 0  ;;  %p50_p0 = scmp.eq.s32.totalorder %s2782_s28, 0 }
 0x132   : > { %p55_p1 = scmp.ne.s32.totalorder %s2774_s26, %s2770_s25  ;;  %p337_p7 = scmp.eq.s32.totalorder %s1856_s20, 1 }
 0x133   : > { %s3196_s29 = scalar_select %p40_p8, %s2778_s27, %s42_s13  }
 0x134   : > { %p3198_p3 = por %p50_p0, %p49_p13  ;;  %p3506_p2 = scmp.eq.s32.totalorder %s3504_s16, 0 }
 0x135   : > { %p331_p5 = scmp.eq.s32.totalorder %s3504_s16, 1  ;;  %p2204_p9 = scmp.lt.s32.totalorder %s2782_s28, 2 }
 0x136   : > { %p3204_p6 = por %p3506_p2, %p55_p1  ;;  %s497_s23 = sand.u32 1, %s2778_s27  }
 0x137   : > { %p3211_p10 = por %p331_p5, %p49_p13  ;;  %p3215_p11 = por %p337_p7, %p55_p1 }
 0x138   : > { %s1871_s22 = sshll.u32 %s497_s23, 3  ;;  %s1872_s30 = sshll.u32 %s2782_s28, 7 }
 0x139   : > { %s3508_s3 = scalar_select %p3211_p10, 1, 0 }
 0x13a   : > { %s3509_s21 = scalar_select %p3215_p11, 1, 0 }
 0x13b   : > { %s3510_s1 = sld [smem:[#allocation37_spill]]  ;;  %s501_s16 = scalar_lea.vmem [#allocation5], %s1871_s22 }
 0x13c   : > { %s508_s20 = sshll.u32 %s501_s16, 4  ;;  %p3229_p12 = pnand %p2204_p9, %p3198_p3  ;;  %s3225_s20 = int_to_ptr.vmem [resolvable:$true] %s508_s20 }
 0x13d   : > { %s498_s13 = scalar_lea.sflag [#allocation6], %s497_s23 }
 0x13e   : > { %p2664_p8 = pneg %p3229_p12 }
 0x141   : > { %s3223_s15 = scalar_lea.hbm %s3510_s1, %s1872_s30  ;;  %s2667_s19 = scalar_lea.hbm %s3510_s1, 256 }
 0x142   : > { %s2662_s2 = scalar_lea.hbm %s3223_s15, 128  ;;  %p2668_p1 = scmp.lt.u32.totalorder %s3223_s15, %s3510_s1 }
 0x143   : > { %p2663_p4 = scmp.ne.s32.totalorder %s3223_s15, %s2662_s2  ;;  %p2669_p3 = scmp.lt.u32.totalorder %s2667_s19, %s2662_s2 }
 0x144   : > { %p2671_p5 = scmp.lt.u32.totalorder %s2662_s2, %s3223_s15 }
 0x145   : > { %p2665_p13 = pnand %p2664_p8, %p2663_p4  ;;  %p2670_p2 = por %p2669_p3, %p2668_p1 }
 0x147   : > { %p2666_p0 = pneg %p2665_p13  ;;  %p2672_p7 = por %p2671_p5, %p2670_p2 }
 0x149   : > { %p2673_p9 = pnand %p2672_p7, %p2666_p0 }
 0x14b   : > { %2676 = shalt.err (!%p2673_p9)
}
 0x14c   : > { %s2677_s23 = scalar_lea.vmem %s3225_s20, 128  ;;  %s2798_s16 = smov [#allocation5]  }
 0x14d   : > { %p2678_p4 = scmp.ne.s32.totalorder %s3225_s20, %s2677_s23  ;;  %s2682_s22 = sshll.u32 %s2798_s16, 4  ;;  %s2683_s22 = int_to_ptr.vmem [resolvable:$false] %s2682_s22 }
 0x14e   : > { %s2684_s30 = scalar_lea.vmem %s2683_s22, 256  ;;  %p2685_p10 = scmp.lt.s32.totalorder %s3225_s20, %s2683_s22 }
 0x14f   : > { %p2680_p13 = pnand %p2678_p4, %p2664_p8  ;;  %p2686_p1 = scmp.lt.s32.totalorder %s2684_s30, %s2677_s23 }
 0x151   : > { %p2681_p11 = pneg %p2680_p13  ;;  %p2687_p3 = por %p2686_p1, %p2685_p10 }
 0x153   : > { %p2688_p2 = pnand %p2687_p3, %p2681_p11 }
 0x155   : > { %2691 = shalt.err (!%p2688_p2)
}
 0x156   : > { %2187 = dma.hbm_to_vmem [thread:$0]  (!%p3229_p12), %s3223_s15, 128, %s3225_s20, %s498_s13  }
 0x157   : > { %s3512_s2 = sld [smem:[#allocation36_spill]] }
 0x15d   : > { %p3513_p0 = scmp.ne.s32.totalorder %s3512_s2, 0 }
 0x15e   : > { %s3261_s19 = sand.u32 (!%p3513_p0), 1, %s2774_s26  }
 0x15f   : > { %517 = sbr.rel (%p3513_p0) target bundleno = 3117 (0xc2d), region = 72  ;;  %s1874_s0 = sshll.u32 (!%p3513_p0), %s3261_s19, 3 }
 0x160   : > { %s520_s17 = scalar_lea.sflag (!%p3513_p0), [#allocation6], %s3261_s19  ;;  %s523_s23 = scalar_lea.vmem (!%p3513_p0), [#allocation5], %s1874_s0 }
 0x166   : > { %2737 = dma.done.wait (%p3204_p6), %s520_s17, 128  }
 0x167   : > { %2739 = vsyncadd (%p3204_p6), %s520_s17, 4294967168  ;;  %s3514_s15 = sld [smem:[#allocation35_spill]] }
 0x16d   : > { %p3515_p10 = scmp.eq.s32.totalorder %s3514_s15, 0 }
 0x16f   : > { %2741 = dma.done.wait (%p3515_p10), [#allocation9], 32   ;;  %p3516_p11 = pmov %p3515_p10 }
 0x170   : > { %p3517_p12 = pmov %p3515_p10 }
 0x171   : > { %2743 = vsyncadd (%p3516_p11), [#allocation9], 4294967264 }
 0x172   : > { %2745 = dma.done.wait (%p3517_p12), [#allocation12], 272   ;;  %p3518_p8 = pmov %p3515_p10 }
 0x174   : > { %2747 = vsyncadd (%p3518_p8), [#allocation12], 4294967024  ;;  %p3519_p5 = pmov %p3518_p8 }
 0x176   : > { %2749 = dma.done.wait (%p3519_p5), [#allocation15], 272   ;;  %p3520_p7 = pmov %p3519_p5 }
 0x177   : > { %p3521_p6 = pmov %p3519_p5 }
 0x178   : > { %2751 = vsyncadd (%p3520_p7), [#allocation15], 4294967024 }
 0x179   : > { %2753 = dma.done.wait (%p3521_p6), [#allocation18], 32   ;;  %p3522_p9 = pmov %p3519_p5 }
 0x17a   : > { %p3523_p4 = pmov %p3519_p5 }
 0x17b   : > { %2755 = vsyncadd (%p3522_p9), [#allocation18], 4294967264 }
 0x17c   : > { %2757 = dma.done.wait (%p3523_p4), [#allocation21], 272   ;;  %p3524_p13 = pmov %p3523_p4 }
 0x17d   : > { %p3525_p1 = pmov %p3523_p4 }
 0x17e   : > { %2759 = vsyncadd (%p3524_p13), [#allocation21], 4294967024 }
 0x17f   : > { %2761 = dma.done.wait (%p3525_p1), [#allocation24], 1040   ;;  %p3526_p3 = pmov %p3525_p1 }
 0x180   : > { %vm618_vm0 = vcmask 261120   ;;  %v3295_v0 = vld [vmem:[%s523_s23] sm:$0xff]  ;;  %v2282_v2 = vld [vmem:[#allocation11] sm:$0xff]   ;;  %s2799_s24 = smov 96   ;;  %s2800_s20 = smov 64   ;;  %v2801_v12 = vmov 0.0  }
 0x181   : > { %2763 = vsyncadd (%p3526_p3), [#allocation24], 4294966256  ;;  %v619_v1 = vsel %vm618_vm0, %v3295_v0, 0.0  ;;  %737 = vrot.lane.b32.xlu1 %v2282_v2, %s2799_s24  ;;  %v2283_v3 = vld [vmem:[#allocation11 + $0x8] sm:$0xff]   ;;  %v2284_v10 = vld [vmem:[#allocation11] sm:$0xff]   ;;  %1987 = vmatprep.subr.bf16.mxu0 %v2801_v12  ;;  %vm2802_vm1 = vmmov 0  }
 0x182   : > { %620 = vadd.xlane.f32.xlu0 %v619_v1  ;;  %v2285_v4 = vld [vmem:[#allocation11 + $0x8] sm:$0xff]   ;;  %v2286_v11 = vld [vmem:[#allocation11] sm:$0xff]   ;;  %1991 = vmatprep.mubr.msk.bf16.mxu0 %vm2802_vm1, %v2801_v12  ;;  %v1894_v14 = vld [vmem:[#allocation13] ss:$0 sm:$0xff]  ;;  %vm715_vm2 = vcmask 257024   ;;  %s2803_s14 = smov 32  }
 0x183   : > { %1988 = vmatpush3.bf16.msra.mxu0 %v2286_v11  ;;  %v2287_v13 = vld [vmem:[#allocation11 + $0x8] sm:$0xff]   ;;  %2011 = vmatprep.subr.bf16.mxu1 %v2801_v12  ;;  %v1888_v19 = vld [vmem:[#allocation8] ss:$0 sm:$0xff]  ;;  %v1889_v21 = vld [vmem:[#allocation10] ss:$0 sm:$0xff]  ;;  %vm793_vm3 = vcmask 519424  }
 0x184   : > { %1989 = vmatprep.subr.bf16.mxu0 %v2801_v12  ;;  %2013 = vmatprep.mubr.msk.bf16.mxu1 %vm2802_vm1, %v2801_v12  ;;  %vm871_vm4 = vcmask 781824   ;;  %s2804_s13 = smov 88   ;;  %s2805_s16 = smov 80   ;;  %vm885_vm5 = vcmask 64512   ;;  %vm949_vm7 = vcmask 1043456   ;;  %vm994_vm8 = vcmask 60416  }
 0x185   : > { %739 = vrot.lane.b32.xlu1 %v2283_v3, %s2799_s24  ;;  %s2806_s22 = smov 120   ;;  %s2807_s30 = smov 72   ;;  %vm1117_vm9 = vcmask 126016   ;;  %vm1240_vm10 = vcmask 191616   ;;  %vm1363_vm11 = vcmask 257216  }
 0x186   : > { %s2808_s2 = smov 112   ;;  %s2809_s17 = smov 104  }
 0x187   : > { %1990 = vmatpush3.bf16.msra.mxu0 %v2287_v13  ;;  %s2811_s23 = smov 56   ;;  %p3528_p0 = scmp.ne.s32.totalorder %s3508_s3, 0 }
 0x188   : > { %1995 = vmatprep.subr.bf16.mxu0 %v2801_v12 }
 0x189   : > { %817 = vrot.lane.b32.xlu1 %v2285_v4, %s2800_s20  ;;  %v873_v4 = vlaneseq }
 0x18d   : > { %743 = vrot.lane.b32.xlu1 %v1894_v14, %s2799_s24 }
 0x191   : > { %821 = vrot.lane.b32.xlu1 %v1894_v14, %s2800_s20 }
 0x1f3   : > { %v738_v23 = vpop.permute.xlu1 %737 }
 0x1f7   : > { %v740_v26 = vpop.permute.xlu1 %739 }
 0x1fb   : > { %v818_v28 = vpop.permute.xlu1 %817 }
 0x1ff   : > { %v744_v35 = vpop.permute.xlu1 %743 }
 0x203   : > { %v822_v42 = vpop.permute.xlu1 %821 }
 0x20f   : > { %v621_v5 = vpop.xlane.xlu0 %620 }
 0x210   : > { %v623_v6 = vmul.f32 0.03125, %v621_v5  ;;  %v874_v5 = vshrl.u32 %v873_v4, 7 }
 0x212   : > { %v624_v7 = vsub.f32 %v3295_v0, %v623_v6  ;;  %v876_v6 = vand.u32 127, %v873_v4 }
 0x214   : > { %v625_v8 = vmul.f32 %v624_v7, %v624_v7  ;;  %vm877_vm6 = vcmp.ge.s32.totalorder %v874_v5, %v876_v6 }
 0x216   : > { %v626_v9 = vsel %vm618_vm0, %v625_v8, 0.0 }
 0x217   : > { %627 = vadd.xlane.f32.xlu0 %v626_v9 }
 0x22d   : > { %815 = vrot.lane.b32.xlu0 %v2284_v10, %s2800_s20 }
 0x2a4   : > { %v628_v15 = vpop.xlane.xlu0 %627 }
 0x2a5   : > { %v629_v16 = vmul.f32 0.03125, %v628_v15 }
 0x2a7   : > { %v630_v17 = vadd.f32 1e-05, %v629_v16 }
 0x2a8   : > { %v816_v27 = vpop.permute.xlu0 %815 }
 0x2a9   : > { %2304 = vrsqrt.f32 %v630_v17 }
 0x2b3   : > { %v2305_v18 = vpop.eup %2304 }
 0x2b4   : > { %v632_v20 = vmul.f32 %v2305_v18, %v624_v7  ;;  %v2810_v7 = vmov -10000.0  }
 0x2b5   : > { %v878_v8 = vsel %vm877_vm6, 0.0, %v2810_v7 }
 0x2b6   : > { %v639_v22 = vmul.f32 %v1888_v19, %v632_v20 }
 0x2b8   : > { %v646_v24 = vadd.f32 %v1889_v21, %v639_v22 }
 0x2ba   : > { %v647_v25 = vpack.c.bf16 %v646_v24, %v646_v24 }
 0x2bc   : > { %1992 = vmatmul.mubr.msk.bf16.vlgmr.msra.gmra.mrb[0].mxu0 %vm618_vm0, %v647_v25 }
 0x2bd   : > { %1996 = vmatpush3.bf16.msra.mxu0 %v738_v23  ;;  %1999 = vmatprep.mubr.msk.bf16.mxu0 %vm2802_vm1, %v2801_v12 }
 0x2be   : > { %1997 = vmatprep.subr.bf16.mxu0 %v2801_v12 }
 0x2c1   : > { %1998 = vmatpush3.bf16.msra.mxu0 %v740_v26 }
 0x2c2   : > { %2003 = vmatprep.subr.bf16.mxu0 %v2801_v12 }
 0x2c4   : > { %2000 = vmatmul.mubr.msk.bf16.vlgmr.msra.gmra.mrb[4].mxu0 %vm618_vm0, %v647_v25 }
 0x2c5   : > { %2004 = vmatpush3.bf16.msra.mxu0 %v816_v27  ;;  %2007 = vmatprep.mubr.msk.bf16.mxu0 %vm2802_vm1, %v2801_v12 }
 0x2c6   : > { %2005 = vmatprep.subr.bf16.mxu0 %v2801_v12 }
 0x2c9   : > { %2006 = vmatpush3.bf16.msra.mxu0 %v818_v28 }
 0x2ca   : > { %2017 = vmatprep.subr.bf16.mxu0 %v2801_v12 }
 0x2cc   : > { %2008 = vmatmul.mubr.msk.bf16.vlgmr.msra.gmra.mrb[8].mxu0 %vm618_vm0, %v647_v25 }
 0x2cd   : > { %2019 = vmatprep.mubr.msk.bf16.mxu0 %vm2802_vm1, %v2801_v12 }
 0x38f   : > { %v708_v29 = vpop.f32.mrb[0].mxu0 }
 0x390   : > { %v709_v30 = vadd.f32 %v1894_v14, %v708_v29  ;;  %v1993_v31 = vpop.f32.mrb[1].mxu0 }
 0x391   : > { %v711_v32 = vpop.f32.mrb[2].mxu0 }
 0x392   : > { %v714_v33 = vpack.c.bf16 %v709_v30, %v709_v30  ;;  %v1994_v34 = vpop.f32.mrb[3].mxu0 }
 0x394   : > { %716 = vst.msk [vmem:[#allocation2] sm:$0xf] %vm715_vm2, %v714_v33 }
 0x397   : > { %v780_v36 = vpop.f32.mrb[4].mxu0 }
 0x398   : > { %v781_v37 = vadd.f32 %v780_v36, %v744_v35  ;;  %v2001_v38 = vpop.f32.mrb[5].mxu0 }
 0x399   : > { %v783_v39 = vpop.f32.mrb[6].mxu0 }
 0x39a   : > { %v1942_v40 = vpack.c.bf16 %v781_v37, %v781_v37  ;;  %v2002_v41 = vpop.f32.mrb[7].mxu0 }
 0x39c   : > { %790 = vrot.lane.b32.xlu1 %v1942_v40, %s2803_s14  ;;  %s2813_s14 = smov 40  }
 0x39f   : > { %v858_v43 = vpop.f32.mrb[8].mxu0 }
 0x3a0   : > { %v859_v44 = vadd.f32 %v858_v43, %v822_v42  ;;  %v2009_v45 = vpop.f32.mrb[9].mxu0 }
 0x3a1   : > { %v861_v46 = vpop.f32.mrb[10].mxu0 }
 0x3a2   : > { %v1943_v47 = vpack.c.bf16 %v859_v44, %v859_v44  ;;  %v2010_v48 = vpop.f32.mrb[11].mxu0 }
 0x3a4   : > { %868 = vrot.lane.b32.xlu1 %v1943_v47, %s2800_s20 }
 0x40e   : > { %v791_v49 = vpop.permute.xlu1 %790 }
 0x40f   : > { %794 = vst.msk [vmem:[#allocation2] sm:$0xf] %vm793_vm3, %v791_v49 }
 0x416   : > { %v869_v50 = vpop.permute.xlu1 %868 }
 0x417   : > { %872 = vst.msk [vmem:[#allocation2] sm:$0xf] %vm871_vm4, %v869_v50 }
 0x41e   : > { %v3329_v51 = vld [vmem:[#allocation2] ss:$0 sps:$4 sm:$0xff]  }
 0x41f   : > { %v879_v52 = vld [vmem:[#allocation2] sm:$0xf]  ;;  %1002 = vrot.lane.b32.xlu0 %v3329_v51, %s2804_s13  ;;  %s2815_s13 = smov 16  }
 0x420   : > { %v3331_v53 = vcombine.low %v879_v52, %v879_v52  ;;  %v3336_v54 = vld [vmem:[#allocation2] ss:$0 sps:$4 sm:$0xff]  }
 0x421   : > { %v3340_v55 = vld [vmem:[#allocation2] ss:$0 sps:$4 sm:$0xff]  }
 0x422   : > { %883 = vrot.lane.b32.xlu1 %v3331_v53, %s2799_s24  ;;  %s2812_s24 = smov 48  }
 0x423   : > { %1125 = vrot.lane.b32.xlu0 %v3336_v54, %s2805_s16  ;;  %s2816_s16 = smov 24  }
 0x426   : > { %1000 = vrot.lane.b32.xlu1 %v3329_v51, %s2806_s22  ;;  %s1939_s22 = sshll.u32 %s3514_s15, 7 }
 0x427   : > { %1248 = vrot.lane.b32.xlu0 %v3340_v55, %s2807_s30  ;;  %s613_s30 = scalar_lea.vmem [#allocation26], %s1874_s0  ;;  %s2817_s0 = smov [#allocation26]  }
 0x428   : > { %s2696_s15 = sshll.u32 %s2817_s0, 4  ;;  %s2697_s15 = int_to_ptr.vmem [resolvable:$false] %s2696_s15 }
 0x42a   : > { %1123 = vrot.lane.b32.xlu1 %v3336_v54, %s2808_s2  ;;  %s1672_s2 = sshll.u32 %s613_s30, 4  ;;  %s3425_s2 = int_to_ptr.vmem [resolvable:$true] %s1672_s2 }
 0x42b   : > { %p2699_p12 = scmp.lt.s32.totalorder %s3425_s2, %s2697_s15 }
 0x42e   : > { %1246 = vrot.lane.b32.xlu1 %v3340_v55, %s2809_s17 }
 0x491   : > { %v1003_v58 = vpop.permute.xlu0 %1002 }
 0x492   : > { %v1008_v59 = vsel %vm885_vm5, %v1003_v58, 0 }
 0x494   : > { %v884_v56 = vpop.permute.xlu1 %883 }
 0x495   : > { %v890_v57 = vsel %vm885_vm5, %v884_v56, 0  ;;  %v1126_v60 = vpop.permute.xlu0 %1125 }
 0x496   : > { %2012 = vmatpush3.bf16.xpose.msra.mxu1 %v890_v57  ;;  %v1131_v62 = vsel %vm885_vm5, %v1126_v60, 0 }
 0x497   : > { %2023 = vmatprep.subr.bf16.mxu1 %v2801_v12 }
 0x498   : > { %v1001_v61 = vpop.permute.xlu1 %1000 }
 0x499   : > { %v1249_v63 = vpop.permute.xlu0 %1248 }
 0x49a   : > { %v1254_v2 = vsel %vm885_vm5, %v1249_v63, 0 }
 0x49c   : > { %v1124_v1 = vpop.permute.xlu1 %1123 }
 0x49d   : > { %2014 = vmatmul.mubr.msk.bf16.vlgmr.msra.gmra.mrb[0].mxu1 %vm885_vm5, %v879_v52 }
 0x49e   : > { %2024 = vmatpush3.bf16.xpose.msra.mxu1 %v1008_v59  ;;  %2025 = vmatprep.mubr.msk.bf16.mxu1 %vm2802_vm1, %v2801_v12 }
 0x49f   : > { %2035 = vmatprep.subr.bf16.mxu1 %v2801_v12 }
 0x4a0   : > { %v1247_v3 = vpop.permute.xlu1 %1246 }
 0x4a5   : > { %2026 = vmatmul.mubr.msk.bf16.vlgmr.msra.gmra.mrb[4].mxu1 %vm885_vm5, %v1001_v61 }
 0x4a6   : > { %2036 = vmatpush3.bf16.xpose.msra.mxu1 %v1131_v62  ;;  %2037 = vmatprep.mubr.msk.bf16.mxu1 %vm2802_vm1, %v2801_v12 }
 0x4a7   : > { %2047 = vmatprep.subr.bf16.mxu1 %v2801_v12 }
 0x4ad   : > { %2038 = vmatmul.mubr.msk.bf16.vlgmr.msra.gmra.mrb[8].mxu1 %vm885_vm5, %v1124_v1 }
 0x4ae   : > { %2048 = vmatpush3.bf16.xpose.msra.mxu1 %v1254_v2  ;;  %2049 = vmatprep.mubr.msk.bf16.mxu1 %vm2802_vm1, %v2801_v12 }
 0x4af   : > { %2059 = vmatprep.subr.bf16.mxu1 %v2801_v12 }
 0x4b5   : > { %2050 = vmatmul.mubr.msk.bf16.vlgmr.msra.gmra.mrb[12].mxu1 %vm885_vm5, %v1247_v3 }
 0x4b6   : > { %2063 = vmatprep.mubr.msk.bf16.mxu1 %vm2802_vm1, %v2801_v12 }
 0x570   : > { %v926_v9 = vpop.f32.mrb[0].mxu1 }
 0x571   : > { %v927_v10 = vadd.f32 %v926_v9, %v878_v8  ;;  %v2015_v11 = vpop.f32.mrb[1].mxu1 }
 0x572   : > { %v929_v13 = vpop.f32.mrb[2].mxu1 }
 0x573   : > { %v2016_v14 = vpop.f32.mrb[3].mxu1  ;;  %v932_v15 = vsel %vm885_vm5, %v927_v10, -inf }
 0x574   : > { %933 = vmax.xlane.f32.xlu0 %v932_v15 }
 0x578   : > { %v1044_v16 = vpop.f32.mrb[4].mxu1 }
 0x579   : > { %v1045_v17 = vadd.f32 %v1044_v16, %v878_v8  ;;  %v2027_v18 = vpop.f32.mrb[5].mxu1 }
 0x57a   : > { %v1047_v19 = vpop.f32.mrb[6].mxu1 }
 0x57b   : > { %v2028_v20 = vpop.f32.mrb[7].mxu1  ;;  %v1050_v21 = vsel %vm885_vm5, %v1045_v17, -inf }
 0x57c   : > { %1051 = vmax.xlane.f32.xlu1 %v1050_v21 }
 0x580   : > { %v1167_v22 = vpop.f32.mrb[8].mxu1 }
 0x581   : > { %v1168_v23 = vadd.f32 %v1167_v22, %v878_v8  ;;  %v2039_v24 = vpop.f32.mrb[9].mxu1 }
 0x582   : > { %v1170_v25 = vpop.f32.mrb[10].mxu1 }
 0x583   : > { %v2040_v26 = vpop.f32.mrb[11].mxu1  ;;  %v1173_v27 = vsel %vm885_vm5, %v1168_v23, -inf }
 0x584   : > { %1174 = vmax.xlane.f32.xlu0 %v1173_v27  ;;  %v2292_v26 = vld [vmem:[#allocation14] sm:$0xff]  }
 0x585   : > { %2060 = vmatpush3.bf16.msra.mxu1 %v2292_v26 }
 0x586   : > { %2061 = vmatprep.subr.bf16.mxu1 %v2801_v12 }
 0x588   : > { %v1290_v28 = vpop.f32.mrb[12].mxu1 }
 0x589   : > { %v1291_v29 = vadd.f32 %v1290_v28, %v878_v8  ;;  %v2051_v30 = vpop.f32.mrb[13].mxu1  ;;  %v2293_v28 = vld [vmem:[#allocation14 + $0x8] sm:$0xff]  }
 0x58a   : > { %v1293_v31 = vpop.f32.mrb[14].mxu1  ;;  %2062 = vmatpush3.bf16.msra.mxu1 %v2293_v28 }
 0x58b   : > { %v2052_v32 = vpop.f32.mrb[15].mxu1  ;;  %v1296_v33 = vsel %vm885_vm5, %v1291_v29, -inf  ;;  %2075 = vmatprep.subr.bf16.mxu1 %v2801_v12 }
 0x58c   : > { %1297 = vmax.xlane.f32.xlu0 %v1296_v33 }
 0x601   : > { %v934_v34 = vpop.xlane.xlu0 %933 }
 0x602   : > { %v935_v35 = vsub.f32 %v927_v10, %v934_v34 }
 0x604   : > { %v936_v36 = vmul.f32 1.442695, %v935_v35 }
 0x606   : > { %2306 = vpow2.f32 %v936_v36 }
 0x609   : > { %v1052_v37 = vpop.xlane.xlu1 %1051 }
 0x60a   : > { %v1053_v38 = vsub.f32 %v1045_v17, %v1052_v37 }
 0x60c   : > { %v1054_v39 = vmul.f32 1.442695, %v1053_v38 }
 0x60e   : > { %2308 = vpow2.f32 %v1054_v39 }
 0x610   : > { %v2307_v40 = vpop.eup %2306 }
 0x611   : > { %v938_v41 = vsel %vm885_vm5, %v2307_v40, 0.0  ;;  %v1175_v42 = vpop.xlane.xlu0 %1174 }
 0x612   : > { %939 = vadd.xlane.f32.xlu1 %v938_v41  ;;  %v1176_v50 = vsub.f32 %v1168_v23, %v1175_v42  ;;  %v1919_v42 = vld [vmem:[#allocation16] ss:$0 sm:$0xff] }
 0x614   : > { %v1177_v52 = vmul.f32 1.442695, %v1176_v50 }
 0x618   : > { %v2309_v43 = vpop.eup %2308 }
 0x619   : > { %v1298_v44 = vpop.xlane.xlu0 %1297  ;;  %v1056_v45 = vsel %vm885_vm5, %v2309_v43, 0.0 }
 0x61a   : > { %v1299_v46 = vsub.f32 %v1291_v29, %v1298_v44  ;;  %1057 = vadd.xlane.f32.xlu0 %v1056_v45 }
 0x61c   : > { %v1300_v47 = vmul.f32 1.442695, %v1299_v46  ;;  %v1925_v46 = vld [vmem:[#allocation25] ss:$0 sm:$0xff] }
 0x61e   : > { %2310 = vpow2.f32 %v1300_v47 }
 0x61f   : > { %2312 = vpow2.f32 %v1177_v52 }
 0x623   : > { %944 = vrot.lane.b32.xlu1 %v3331_v53, %s2800_s20  ;;  %s2814_s20 = smov 8  }
 0x628   : > { %v2311_v48 = vpop.eup %2310 }
 0x629   : > { %v1302_v49 = vsel %vm885_vm5, %v2311_v48, 0.0  ;;  %v2313_v56 = vpop.eup %2312 }
 0x62a   : > { %1303 = vadd.xlane.f32.xlu0 %v1302_v49  ;;  %v1179_v57 = vsel %vm885_vm5, %v2313_v56, 0.0 }
 0x640   : > { %1062 = vrot.lane.b32.xlu0 %v3329_v51, %s2811_s23 }
 0x647   : > { %1180 = vadd.xlane.f32.xlu1 %v1179_v57 }
 0x658   : > { %1185 = vrot.lane.b32.xlu1 %v3336_v54, %s2812_s24  ;;  %s3527_s24 = sld [smem:[#allocation41_spill]] }
 0x65c   : > { %1308 = vrot.lane.b32.xlu1 %v3340_v55, %s2813_s14 }
 0x65e   : > { %s3423_s14 = scalar_lea.hbm %s3527_s24, %s1939_s22 }
 0x69f   : > { %v940_v53 = vpop.xlane.xlu1 %939 }
 0x6a0   : > { %2314 = vrcp.f32 %v940_v53 }
 0x6a3   : > { %v945_v58 = vpop.permute.xlu1 %944 }
 0x6a4   : > { %v951_v59 = vsel %vm949_vm7, %v945_v58, 0 }
 0x6a5   : > { %2018 = vmatpush3.bf16.msra.mxu0 %v951_v59 }
 0x6a6   : > { %2029 = vmatprep.subr.bf16.mxu0 %v2801_v12 }
 0x6a7   : > { %v1058_v60 = vpop.xlane.xlu0 %1057 }
 0x6a8   : > { %2316 = vrcp.f32 %v1058_v60  ;;  %v2295_v60 = vld [vmem:[#allocation20 + $0x8] sm:$0xff]  }
 0x6aa   : > { %v2315_v51 = vpop.eup %2314 }
 0x6ab   : > { %v942_v61 = vmul.f32 %v2315_v51, %v2307_v40  ;;  %v2294_v51 = vld [vmem:[#allocation20] sm:$0xff]  }
 0x6ad   : > { %v943_v62 = vpack.c.bf16 %v942_v61, %v942_v61 }
 0x6af   : > { %2020 = vmatmul.mubr.msk.bf16.vlgmr.msra.gmra.mrb[12].mxu0 %vm885_vm5, %v943_v62 }
 0x6b0   : > { %2031 = vmatprep.mubr.msk.bf16.mxu0 %vm2802_vm1, %v2801_v12 }
 0x6b2   : > { %v2317_v54 = vpop.eup %2316 }
 0x6b3   : > { %v1060_v63 = vmul.f32 %v2317_v54, %v2309_v43 }
 0x6b5   : > { %v1061_v3 = vpack.c.bf16 %v1060_v63, %v1060_v63  ;;  %v1923_v63 = vld [vmem:[#allocation17] ss:$0 sm:$0xff] }
 0x6b7   : > { %v1304_v55 = vpop.xlane.xlu0 %1303 }
 0x6bb   : > { %v1063_v1 = vpop.permute.xlu0 %1062 }
 0x6bc   : > { %v1068_v2 = vsel %vm949_vm7, %v1063_v1, 0 }
 0x6bd   : > { %2030 = vmatpush3.bf16.msra.mxu0 %v1068_v2  ;;  %v1924_v2 = vld [vmem:[#allocation19] ss:$0 sm:$0xff] }
 0x6be   : > { %2041 = vmatprep.subr.bf16.mxu0 %v2801_v12 }
 0x6c0   : > { %2032 = vmatmul.mubr.msk.bf16.vlgmr.msra.gmra.mrb[16].mxu0 %vm885_vm5, %v1061_v3 }
 0x6c1   : > { %2043 = vmatprep.mubr.msk.bf16.mxu0 %vm2802_vm1, %v2801_v12 }
 0x6d4   : > { %v1181_v4 = vpop.xlane.xlu1 %1180 }
 0x6d5   : > { %2318 = vrcp.f32 %v1181_v4 }
 0x6d6   : > { %2320 = vrcp.f32 %v1304_v55 }
 0x6d8   : > { %v1186_v5 = vpop.permute.xlu1 %1185 }
 0x6d9   : > { %v1191_v6 = vsel %vm949_vm7, %v1186_v5, 0 }
 0x6da   : > { %2042 = vmatpush3.bf16.msra.mxu0 %v1191_v6  ;;  %v2297_v6 = vld [vmem:[#allocation23 + $0x8] sm:$0xff]  }
 0x6db   : > { %2053 = vmatprep.subr.bf16.mxu0 %v2801_v12 }
 0x6dc   : > { %v1309_v9 = vpop.permute.xlu1 %1308 }
 0x6dd   : > { %v1314_v13 = vsel %vm949_vm7, %v1309_v9, 0  ;;  %v2300_v9 = vld [vmem:[#allocation23 + $0x20] sm:$0xff]  }
 0x6df   : > { %v2319_v7 = vpop.eup %2318 }
 0x6e0   : > { %v1183_v8 = vmul.f32 %v2319_v7, %v2313_v56  ;;  %v2321_v11 = vpop.eup %2320  ;;  %v2298_v7 = vld [vmem:[#allocation23 + $0x10] sm:$0xff]  }
 0x6e1   : > { %v1306_v14 = vmul.f32 %v2321_v11, %v2311_v48  ;;  %v2302_v11 = vld [vmem:[#allocation23 + $0x30] sm:$0xff]  }
 0x6e2   : > { %v1184_v10 = vpack.c.bf16 %v1183_v8, %v1183_v8  ;;  %v2299_v8 = vld [vmem:[#allocation23 + $0x18] sm:$0xff]  }
 0x6e3   : > { %v1307_v15 = vpack.c.bf16 %v1306_v14, %v1306_v14  ;;  %v1926_v14 = vld [vmem:[#allocation22] ss:$0 sm:$0xff] }
 0x6e4   : > { %2044 = vmatmul.mubr.msk.bf16.vlgmr.msra.gmra.mrb[20].mxu0 %vm885_vm5, %v1184_v10  ;;  %v2301_v10 = vld [vmem:[#allocation23 + $0x28] sm:$0xff]  }
 0x6e5   : > { %2054 = vmatpush3.bf16.msra.mxu0 %v1314_v13  ;;  %2055 = vmatprep.mubr.msk.bf16.mxu0 %vm2802_vm1, %v2801_v12  ;;  %v2303_v13 = vld [vmem:[#allocation23 + $0x38] sm:$0xff]  }
 0x6e6   : > { %2067 = vmatprep.subr.bf16.mxu0 %v2801_v12 }
 0x6ec   : > { %2056 = vmatmul.mubr.msk.bf16.vlgmr.msra.gmra.mrb[24].mxu0 %vm885_vm5, %v1307_v15 }
 0x6ed   : > { %2071 = vmatprep.mubr.msk.bf16.mxu0 %vm2802_vm1, %v2801_v12  ;;  %2068 = vmatpush3.bf16.msra.mxu0 %v2294_v51 }
 0x6ee   : > { %2069 = vmatprep.subr.bf16.mxu0 %v2801_v12 }
 0x6f1   : > { %2070 = vmatpush3.bf16.msra.mxu0 %v2295_v60 }
 0x782   : > { %v987_v16 = vpop.f32.mrb[12].mxu0 }
 0x783   : > { %v993_v17 = vpack.c.bf16 %v987_v16, %v987_v16  ;;  %v2021_v18 = vpop.f32.mrb[13].mxu0 }
 0x784   : > { %v990_v19 = vpop.f32.mrb[14].mxu0 }
 0x785   : > { %995 = vst.msk [vmem:[#allocation3] sm:$0xf] %vm994_vm8, %v993_v17  ;;  %v2022_v20 = vpop.f32.mrb[15].mxu0 }
 0x793   : > { %v1104_v21 = vpop.f32.mrb[16].mxu0 }
 0x794   : > { %v1944_v22 = vpack.c.bf16 %v1104_v21, %v1104_v21  ;;  %v2033_v23 = vpop.f32.mrb[17].mxu0 }
 0x795   : > { %v1107_v24 = vpop.f32.mrb[18].mxu0 }
 0x796   : > { %1114 = vrot.lane.b32.xlu0 %v1944_v22, %s2814_s20  ;;  %v2034_v25 = vpop.f32.mrb[19].mxu0  ;;  %s1659_s20 = scalar_lea.sflag [#allocation7], %s3261_s19 }
 0x7b7   : > { %v1227_v27 = vpop.f32.mrb[20].mxu0 }
 0x7b8   : > { %v1945_v29 = vpack.c.bf16 %v1227_v27, %v1227_v27  ;;  %v2045_v30 = vpop.f32.mrb[21].mxu0 }
 0x7b9   : > { %v1230_v31 = vpop.f32.mrb[22].mxu0 }
 0x7ba   : > { %1237 = vrot.lane.b32.xlu1 %v1945_v29, %s2815_s13  ;;  %v2046_v32 = vpop.f32.mrb[23].mxu0  ;;  %s2692_s13 = scalar_lea.vmem %s3425_s2, 128 }
 0x7bb   : > { %p2693_p2 = scmp.ne.s32.totalorder %s3425_s2, %s2692_s13 }
 0x7bd   : > { %p2694_p10 = pnand %p2693_p2, %p3528_p0 }
 0x7bf   : > { %v1350_v33 = vpop.f32.mrb[24].mxu0  ;;  %p2695_p11 = pneg %p2694_p10 }
 0x7c0   : > { %v1946_v34 = vpack.c.bf16 %v1350_v33, %v1350_v33  ;;  %v2057_v35 = vpop.f32.mrb[25].mxu0 }
 0x7c1   : > { %v1353_v36 = vpop.f32.mrb[26].mxu0 }
 0x7c2   : > { %1360 = vrot.lane.b32.xlu0 %v1946_v34, %s2816_s16  ;;  %v2058_v37 = vpop.f32.mrb[27].mxu0  ;;  %s2698_s16 = scalar_lea.vmem %s2697_s15, 256 }
 0x7c3   : > { %p2700_p8 = scmp.lt.s32.totalorder %s2698_s16, %s2692_s13 }
 0x7c5   : > { %p2701_p5 = por %p2700_p8, %p2699_p12 }
 0x7c7   : > { %p2702_p7 = pnand %p2701_p5, %p2695_p11 }
 0x808   : > { %v1115_v38 = vpop.permute.xlu0 %1114 }
 0x809   : > { %1118 = vst.msk [vmem:[#allocation3] sm:$0xf] %vm1117_vm9, %v1115_v38 }
 0x82c   : > { %v1238_v39 = vpop.permute.xlu1 %1237 }
 0x82d   : > { %1241 = vst.msk [vmem:[#allocation3] sm:$0xf] %vm1240_vm10, %v1238_v39 }
 0x834   : > { %v1361_v40 = vpop.permute.xlu0 %1360 }
 0x835   : > { %1364 = vst.msk [vmem:[#allocation3] sm:$0xf] %vm1363_vm11, %v1361_v40 }
 0x83c   : > { %v1365_v41 = vld [vmem:[#allocation3] sm:$0xf] }
 0x83d   : > { %2064 = vmatmul.mubr.msk.bf16.vlgmr.msra.gmra.mrb[16].mxu1 %vm618_vm0, %v1365_v41 }
 0x83e   : > { %2091 = vmatprep.mubr.msk.bf16.mxu1 %vm2802_vm1, %v2801_v12 }
 0x910   : > { %v1426_v43 = vpop.f32.mrb[16].mxu1 }
 0x911   : > { %v1427_v44 = vadd.f32 %v1919_v42, %v1426_v43  ;;  %v2065_v45 = vpop.f32.mrb[17].mxu1 }
 0x912   : > { %v1429_v47 = vpop.f32.mrb[18].mxu1 }
 0x913   : > { %v1433_v48 = vadd.f32 %v1427_v44, %v3295_v0  ;;  %v2066_v49 = vpop.f32.mrb[19].mxu1  ;;  %v2296_v0 = vld [vmem:[#allocation23] sm:$0xff]  }
 0x914   : > { %2076 = vmatpush3.bf16.msra.mxu1 %v2296_v0 }
 0x915   : > { %v1471_v50 = vadd.f32 %v1925_v46, %v1433_v48  ;;  %v1436_v52 = vsel %vm618_vm0, %v1433_v48, 0.0  ;;  %2077 = vmatprep.subr.bf16.mxu1 %v2801_v12 }
 0x916   : > { %1437 = vadd.xlane.f32.xlu1 %v1436_v52 }
 0x917   : > { %1472 = vst.msk [vmem:[#allocation4] sm:$0xff] %vm618_vm0, %v1471_v50 }
 0x918   : > { %2078 = vmatpush3.bf16.msra.mxu1 %v2297_v6 }
 0x919   : > { %2079 = vmatprep.subr.bf16.mxu1 %v2801_v12 }
 0x91c   : > { %2080 = vmatpush3.bf16.msra.mxu1 %v2298_v7 }
 0x91d   : > { %2081 = vmatprep.subr.bf16.mxu1 %v2801_v12 }
 0x91e   : > { %v1548_v29 = vld [vmem:[#allocation4] sm:$0xff] }
 0x920   : > { %2082 = vmatpush3.bf16.msra.mxu1 %v2299_v8 }
 0x921   : > { %2083 = vmatprep.subr.bf16.mxu1 %v2801_v12 }
 0x924   : > { %2084 = vmatpush3.bf16.msra.mxu1 %v2300_v9 }
 0x925   : > { %2085 = vmatprep.subr.bf16.mxu1 %v2801_v12 }
 0x928   : > { %2086 = vmatpush3.bf16.msra.mxu1 %v2301_v10 }
 0x929   : > { %2087 = vmatprep.subr.bf16.mxu1 %v2801_v12 }
 0x92c   : > { %2088 = vmatpush3.bf16.msra.mxu1 %v2302_v11 }
 0x92d   : > { %2089 = vmatprep.subr.bf16.mxu1 %v2801_v12 }
 0x930   : > { %2090 = vmatpush3.bf16.msra.mxu1 %v2303_v13 }
 0x9a3   : > { %v1438_v56 = vpop.xlane.xlu1 %1437 }
 0x9a4   : > { %v1439_v57 = vmul.f32 0.03125, %v1438_v56 }
 0x9a6   : > { %v1440_v53 = vsub.f32 %v1433_v48, %v1439_v57 }
 0x9a8   : > { %v1441_v58 = vmul.f32 %v1440_v53, %v1440_v53 }
 0x9aa   : > { %v1442_v59 = vsel %vm618_vm0, %v1441_v58, 0.0 }
 0x9ab   : > { %1443 = vadd.xlane.f32.xlu0 %v1442_v59 }
 0xa38   : > { %v1444_v61 = vpop.xlane.xlu0 %1443 }
 0xa39   : > { %v1445_v62 = vmul.f32 0.03125, %v1444_v61 }
 0xa3b   : > { %v1446_v54 = vadd.f32 1e-05, %v1445_v62 }
 0xa3d   : > { %2322 = vrsqrt.f32 %v1446_v54 }
 0xa47   : > { %v2323_v55 = vpop.eup %2322 }
 0xa48   : > { %v1448_v1 = vmul.f32 %v2323_v55, %v1440_v53 }
 0xa4a   : > { %v1455_v3 = vmul.f32 %v1923_v63, %v1448_v1 }
 0xa4c   : > { %v1462_v4 = vadd.f32 %v1924_v2, %v1455_v3 }
 0xa4e   : > { %v1463_v5 = vpack.c.bf16 %v1462_v4, %v1462_v4 }
 0xa50   : > { %2072 = vmatmul.mubr.msk.bf16.vlgmr.msra.gmra.mrb[28].mxu0 %vm618_vm0, %v1463_v5 }
 0xb23   : > { %v1533_v15 = vpop.f32.mrb[28].mxu0 }
 0xb24   : > { %v1534_v16 = vadd.f32 %v1926_v14, %v1533_v15  ;;  %v2073_v17 = vpop.f32.mrb[29].mxu0 }
 0xb25   : > { %v1536_v18 = vpop.f32.mrb[30].mxu0 }
 0xb26   : > { %v1540_v19 = vmul.f32 %v1534_v16, %v1534_v16  ;;  %v2074_v20 = vpop.f32.mrb[31].mxu0  ;;  %v1539_v26 = vmul.f32 0.5, %v1534_v16 }
 0xb28   : > { %v1541_v21 = vmul.f32 %v1540_v19, %v1534_v16 }
 0xb2a   : > { %v1542_v22 = vmul.f32 0.044715, %v1541_v21 }
 0xb2c   : > { %v1543_v23 = vadd.f32 %v1542_v22, %v1534_v16 }
 0xb2e   : > { %v1544_v24 = vmul.f32 0.7978846, %v1543_v23 }
 0xb30   : > { %2324 = vtanh.f32 %v1544_v24 }
 0xb3a   : > { %v2325_v25 = vpop.eup %2324 }
 0xb3b   : > { %v1546_v27 = vadd.f32 1.0, %v2325_v25 }
 0xb3d   : > { %v1547_v28 = vmul.f32 %v1546_v27, %v1539_v26 }
 0xb3f   : > { %v1549_v12 = vpack.c.bf16 %v1547_v28, %v1547_v28 }
 0xb41   : > { %2092 = vmatmul.mubr.bf16.vlgmr.msra.gmra.mrb[20].mxu1 %v1549_v12 }
 0xc14   : > { %v1648_v30 = vpop.f32.mrb[20].mxu1 }
 0xc15   : > { %v1654_v31 = vadd.f32 %v1648_v30, %v1548_v29  ;;  %v2093_v32 = vpop.f32.mrb[21].mxu1 }
 0xc16   : > { %v1651_v33 = vpop.f32.mrb[22].mxu1 }
 0xc17   : > { %1655 = vst.msk [vmem:[#allocation4] sm:$0xff] %vm618_vm0, %v1654_v31  ;;  %v2094_v34 = vpop.f32.mrb[23].mxu1 }
 0xc1e   : > { %v1656_v35 = vld [vmem:[#allocation4] sm:$0xff] }
 0xc1f   : > { %1657 = vst.msk [vmem:[%s613_s30] sm:$0xff] %vm618_vm0, %v1656_v35 }
 0xc20   : > { %2705 = shalt.err (!%p2702_p7)
}
 0xc21   : > { %s2706_s19 = scalar_lea.hbm %s3423_s14, 128  ;;  %s2710_s17 = scalar_lea.hbm %s3527_s24, 256 }
 0xc22   : > { %p2707_p6 = scmp.ne.s32.totalorder %s3423_s14, %s2706_s19  ;;  %p2711_p13 = scmp.lt.u32.totalorder %s3423_s14, %s3527_s24 }
 0xc23   : > { %p2712_p1 = scmp.lt.u32.totalorder %s2710_s17, %s2706_s19  ;;  %p2714_p2 = scmp.lt.u32.totalorder %s2706_s19, %s3423_s14 }
 0xc24   : > { %p2708_p9 = pnand %p2707_p6, %p3528_p0 }
 0xc25   : > { %p2713_p3 = por %p2712_p1, %p2711_p13 }
 0xc26   : > { %p2709_p4 = pneg %p2708_p9 }
 0xc27   : > { %p2715_p10 = por %p2714_p2, %p2713_p3 }
 0xc29   : > { %p2716_p11 = pnand %p2715_p10, %p2709_p4 }
 0xc2b   : > { %2719 = shalt.err (!%p2716_p11)
}
 0xc2c   : > { %2145 = dma.vmem_to_hbm [thread:$0]  (%p3528_p0), %s3425_s2, 128, %s3423_s14, %s1659_s20  }
 0xc2d PF: > { %s1684_s13 = sand.u32 1, %s2770_s25   ;;  %p3529_p12 = scmp.ne.s32.totalorder %s3509_s21, 0 }
 0xc2e   : > { %p3530_p8 = scmp.ge.s32.totalorder %s2782_s28, 2  ;;  %s1685_s15 = scalar_lea.sflag [#allocation7], %s1684_s13 }
 0xc30   : > { %p2189_p5 = pnand %p3530_p8, %p3529_p12 }
 0xc32   : > { %2765 = dma.done.wait (!%p2189_p5), %s1685_s15, 128  }
 0xc33   : > { %2767 = vsyncadd (!%p2189_p5), %s1685_s15, 4294967168  ;;  %p32_p7 = scmp.ge.s32.totalorder %s3185_s18, 4   ;;  %s3531_s25 = smov %s2774_s26 }
 0xc34   : > { %s3532_s26 = smov %s2778_s27  ;;  %s3533_s27 = smov %s3196_s29 }
 0xc35   : > { %s3534_s28 = smov %s3185_s18  ;;  %34 = sbr.rel (!%p32_p7) target bundleno = 17 (0x11), region = 165 }
 0xc3c   :  { %1690 = vsyncpa [#allocation6], 1 }
 0xc3d   :  { %1692 = vsyncpa [#allocation6 + $0x1], 1 }
 0xc3e   :  { %1693 = vsyncpa [#allocation9], 1 }
 0xc3f   :  { %1694 = vsyncpa [#allocation12], 1 }
 0xc40   :  { %1695 = vsyncpa [#allocation15], 1 }
 0xc41   :  { %1696 = vsyncpa [#allocation18], 1 }
 0xc42   :  { %1697 = vsyncpa [#allocation21], 1 }
 0xc43   :  { %1698 = vsyncpa [#allocation24], 1 }
 0xc44   :  { %1699 = vsyncpa [#allocation7], 1 }
 0xc45   :  { %1701 = vsyncpa [#allocation7 + $0x1], 1 }

</bundles_post_ra>
